<compile_context>
chip_gen: v7x
topology: tpu7x:2x2x1
jax: 0.10.0
libtpu: 0.0.40
codegen_flags: <defaults>
</compile_context>

<pallas_src>
import functools

import jax
import jax.numpy as jnp
from jax import lax
from jax.experimental import pallas as pl
from jax.experimental.pallas import tpu as pltpu

n_embedding = 384
block_size = 256  # causal-mask semantics (tril[:T, :T]) from the PyTorch module


def _head_kernel(x_ref, w_ref, o_ref,
                 q_scr, k_scr, v_scr, m_scr, l_scr, acc_scr,
                 *, tq, head_size):
    # One grid step == (batch element b, query tile qi).
    qi = pl.program_id(1)
    H = head_size

    # Fused QKV projection for the full sequence, computed once per batch
    # element (qi == 0) and carried in VMEM scratch across the qi axis.
    @pl.when(qi == 0)
    def _():
        x = x_ref[0]                                              # (T, C) bf16
        qkv = jnp.dot(x, w_ref[...],
                      preferred_element_type=jnp.float32)         # (T, 3H) f32
        qkv = qkv.astype(jnp.bfloat16)
        q_scr[...] = qkv[:, :H]         # q columns pre-scaled by H**-0.5
        k_scr[...] = qkv[:, H:2 * H]
        v_scr[...] = qkv[:, 2 * H:]

    # Query rows for this tile (read back from scratch; no projection here).
    q_start = pl.multiple_of(qi * tq, tq)
    q = q_scr[pl.ds(q_start, tq), :]                              # (tq, H) bf16

    # Online-softmax running state, re-initialised every grid step.
    m_scr[...] = jnp.full_like(m_scr, -jnp.inf)
    l_scr[...] = jnp.zeros_like(l_scr)
    acc_scr[...] = jnp.zeros_like(acc_scr)

    # Global query-row indices (hoisted out of the kv loop).
    row = q_start + lax.broadcasted_iota(jnp.int32, (tq, 1), 0)   # (tq, 1)

    # Causality: only key tiles kv <= qi contain unmasked entries, so loop
    # over exactly those tiles with an online-softmax accumulator.
    @pl.loop(0, qi + 1)
    def _(kv):
        k_start = pl.multiple_of(kv * tq, tq)
        k = k_scr[pl.ds(k_start, tq), :]                          # (tq, H) bf16
        v = v_scr[pl.ds(k_start, tq), :]                          # (tq, H) bf16

        # scores = q @ k^T, transpose folded into the contraction, f32 acc.
        s = lax.dot_general(q, k, (((1,), (1,)), ((), ())),
                            preferred_element_type=jnp.float32)   # (tq, tq)

        # Causal mask (only actually bites on the diagonal tile kv == qi; the
        # compare/select on earlier tiles is all-true and cheap).
        col = k_start + lax.broadcasted_iota(jnp.int32, (1, tq), 1)
        s = jnp.where(col <= row, s, -jnp.inf)

        m_prev = m_scr[...]
        m_new = jnp.maximum(m_prev, jnp.max(s, axis=-1, keepdims=True))
        alpha = jnp.exp(m_prev - m_new)
        p = jnp.exp(s - m_new)
        l_scr[...] = alpha * l_scr[...] + jnp.sum(p, axis=-1, keepdims=True)
        acc_scr[...] = alpha * acc_scr[...] + jnp.dot(
            p.astype(jnp.bfloat16), v, preferred_element_type=jnp.float32)
        m_scr[...] = m_new

    # dropout(p=0.2): identity in eval mode.
    out = acc_scr[...] * pl.reciprocal(l_scr[...], approx=True)
    o_ref[0] = out.astype(o_ref.dtype)


def _pick_tq(T):
    for tq in (128, 64, 32, 16, 8):
        if T % tq == 0:
            return tq
    return T  # tiny / odd T: single full-extent tile


def head_forward(x, wk, wq, wv):
    """x: (B, T, C) f32; wk/wq/wv: (C, H) f32. Returns (B, T, H) bf16."""
    B, T, C = x.shape
    H = wk.shape[1]
    tq = _pick_tq(T)

    # bf16 MXU operands (f32 accumulation stays in-kernel). The 1/sqrt(H)
    # attention scale is folded into the query weight; q/k/v weights are fused
    # into one (C, 3H) matrix -> one weight DMA, N = 3H on the MXU.
    x_bf = x.astype(jnp.bfloat16)
    w_qkv = jnp.concatenate([wq * (float(H) ** -0.5), wk, wv], axis=1)
    w_qkv = w_qkv.astype(jnp.bfloat16)

    kernel = functools.partial(_head_kernel, tq=tq, head_size=H)
    return pl.pallas_call(
        kernel,
        out_shape=jax.ShapeDtypeStruct((B, T, H), jnp.bfloat16),
        grid=(B, T // tq),
        in_specs=[
            # Full (T, C) slab per batch element; block index is constant over
            # qi so it is not re-DMA'd between consecutive query tiles.
            pl.BlockSpec((1, T, C), lambda b, qi: (b, 0, 0)),
            pl.BlockSpec((C, 3 * H), lambda b, qi: (0, 0)),
        ],
        out_specs=pl.BlockSpec((1, tq, H), lambda b, qi: (b, qi, 0)),
        scratch_shapes=[
            pltpu.VMEM((T, H), jnp.bfloat16),   # q (pre-scaled)
            pltpu.VMEM((T, H), jnp.bfloat16),   # k
            pltpu.VMEM((T, H), jnp.bfloat16),   # v
            pltpu.VMEM((tq, 1), jnp.float32),   # online-softmax running max
            pltpu.VMEM((tq, 1), jnp.float32),   # online-softmax running denom
            pltpu.VMEM((tq, H), jnp.float32),   # output accumulator
        ],
        # Batch axis parallel (megacore / v7x dual-TC); qi must be arbitrary
        # because the QKV scratch is carried across query tiles.
        compiler_params=pltpu.CompilerParams(
            dimension_semantics=("parallel", "arbitrary")
        ),
    )(x_bf, w_qkv)


def head_reference(x, wk, wq, wv):
    """Pure-JAX f32 reference of the PyTorch forward (eval-mode dropout)."""
    k = x @ wk
    q = x @ wq
    v = x @ wv
    H = k.shape[-1]
    wei = jnp.einsum("bth,bsh->bts", q, k) * (H ** -0.5)
    T = x.shape[1]
    mask = jnp.tril(jnp.ones((T, T), dtype=bool))
    wei = jnp.where(mask[None], wei, -jnp.inf)
    wei = jax.nn.softmax(wei, axis=-1)
    return wei @ v


if __name__ == "__main__":
    head_size = 32

    key = jax.random.PRNGKey(0)
    kx, kk, kq, kv = jax.random.split(key, 4)

    # nn.Linear(n_embedding, head_size, bias=False) -> U(-1/sqrt(C), 1/sqrt(C)).
    bound = 1.0 / (n_embedding ** 0.5)
    wk = jax.random.uniform(kk, (n_embedding, head_size), jnp.float32, -bound, bound)
    wq = jax.random.uniform(kq, (n_embedding, head_size), jnp.float32, -bound, bound)
    wv = jax.random.uniform(kv, (n_embedding, head_size), jnp.float32, -bound, bound)

    # Validate at the module's full context (T = block_size = 256, multi-tile
    # path with the causal kv-tile skip) and at a small T = 8 (single tile).
    for B, T in ((2, block_size), (2, 8)):
        x = jax.random.normal(
            jax.random.fold_in(kx, T), (B, T, n_embedding), dtype=jnp.float32
        )

        out = jax.block_until_ready(head_forward(x, wk, wq, wv))
        ref = head_reference(x, wk, wq, wv)

        assert out.shape == (B, T, head_size)
        out_f32 = out.astype(jnp.float32)
        # bf16 operands/output (f32 accumulation) -> loose tolerance vs. pure f32.
        max_err = float(jnp.max(jnp.abs(out_f32 - ref)))
        assert jnp.allclose(out_f32, ref, atol=5e-2, rtol=5e-2), (T, max_err)

    print("KERNEL_OK")
</pallas_src>

<mosaic_0001>
module attributes {stable_mosaic.version = 11 : i64} {
  func.func @_head_kernel(%arg0: i32, %arg1: i32, %arg2: memref<1x256x384xbf16, #tpu.memory_space<vmem>>, %arg3: memref<384x96xbf16, #tpu.memory_space<vmem>>, %arg4: memref<1x128x32xbf16, #tpu.memory_space<vmem>>, %arg5: memref<256x32xbf16, #tpu.memory_space<vmem>>, %arg6: memref<256x32xbf16, #tpu.memory_space<vmem>>, %arg7: memref<256x32xbf16, #tpu.memory_space<vmem>>, %arg8: memref<128x1xf32, #tpu.memory_space<vmem>>, %arg9: memref<128x1xf32, #tpu.memory_space<vmem>>, %arg10: memref<128x32xf32, #tpu.memory_space<vmem>>) attributes {dimension_semantics = [#tpu.dimension_semantics<parallel>, #tpu.dimension_semantics<arbitrary>], iteration_bounds = array<i64: 2, 2>, scalar_prefetch = 0 : i64, scratch_operands = 6 : i64, tpu.core_type = #tpu.core_type<tc>, window_params = [{transform_indices = @transform_0, window_bounds = array<i64: 1, 256, 384>}, {pipeline_mode = #tpu.pipeline_mode<synchronous>, transform_indices = @transform_1, window_bounds = array<i64: 384, 96>}, {transform_indices = @transform_2, window_bounds = array<i64: 1, 128, 32>}]} {
    %c0_i32 = arith.constant 0 : i32
    %0 = arith.cmpi eq, %arg1, %c0_i32 : i32
    %1 = arith.extui %0 : i1 to i32
    %c0_i32_0 = arith.constant 0 : i32
    %2 = arith.cmpi ne, %1, %c0_i32_0 : i32
    scf.if %2 {
      %c0_24 = arith.constant 0 : index
      %c0_25 = arith.constant 0 : index
      %c0_26 = arith.constant 0 : index
      %32 = vector.load %arg2[%c0_24, %c0_25, %c0_26] : memref<1x256x384xbf16, #tpu.memory_space<vmem>>, vector<1x256x384xbf16>
      %33 = vector.shape_cast %32 : vector<1x256x384xbf16> to vector<256x384xbf16>
      %c0_27 = arith.constant 0 : index
      %c0_28 = arith.constant 0 : index
      %34 = vector.load %arg3[%c0_27, %c0_28] : memref<384x96xbf16, #tpu.memory_space<vmem>>, vector<384x96xbf16>
      %cst_29 = arith.constant dense<0.000000e+00> : vector<256x96xf32>
      %35 = tpu.matmul %33, %34, %cst_29 {dimension_numbers = #tpu.dot_dimension_numbers<[1], [0], [0], [1], [0, 0, 1, 1], [], []>} : vector<256x384xbf16>, vector<384x96xbf16>, vector<256x96xf32> -> vector<256x96xf32>
      %36 = arith.truncf %35 : vector<256x96xf32> to vector<256x96xbf16>
      %37 = vector.extract_strided_slice %36 {offsets = [0, 0], sizes = [256, 32], strides = [1, 1]} : vector<256x96xbf16> to vector<256x32xbf16>
      %c0_30 = arith.constant 0 : index
      %c0_31 = arith.constant 0 : index
      %38 = vector.load %arg5[%c0_30, %c0_31] : memref<256x32xbf16, #tpu.memory_space<vmem>>, vector<256x32xbf16>
      tpu.vector_store %arg5[%c0_30, %c0_31], %37 {strides = array<i32>} : memref<256x32xbf16, #tpu.memory_space<vmem>>, vector<256x32xbf16>,
      %39 = vector.extract_strided_slice %36 {offsets = [0, 32], sizes = [256, 32], strides = [1, 1]} : vector<256x96xbf16> to vector<256x32xbf16>
      %c0_32 = arith.constant 0 : index
      %c0_33 = arith.constant 0 : index
      %40 = vector.load %arg6[%c0_32, %c0_33] : memref<256x32xbf16, #tpu.memory_space<vmem>>, vector<256x32xbf16>
      tpu.vector_store %arg6[%c0_32, %c0_33], %39 {strides = array<i32>} : memref<256x32xbf16, #tpu.memory_space<vmem>>, vector<256x32xbf16>,
      %41 = vector.extract_strided_slice %36 {offsets = [0, 64], sizes = [256, 32], strides = [1, 1]} : vector<256x96xbf16> to vector<256x32xbf16>
      %c0_34 = arith.constant 0 : index
      %c0_35 = arith.constant 0 : index
      %42 = vector.load %arg7[%c0_34, %c0_35] : memref<256x32xbf16, #tpu.memory_space<vmem>>, vector<256x32xbf16>
      tpu.vector_store %arg7[%c0_34, %c0_35], %41 {strides = array<i32>} : memref<256x32xbf16, #tpu.memory_space<vmem>>, vector<256x32xbf16>,
    } else {
    }
    %c128_i32 = arith.constant 128 : i32
    %3 = arith.muli %arg1, %c128_i32 : i32
    %4 = tpu.assume_multiple %3, 128 : i32
    %5 = arith.index_cast %4 : i32 to index
    %c0 = arith.constant 0 : index
    %6 = vector.load %arg5[%5, %c0] : memref<256x32xbf16, #tpu.memory_space<vmem>>, vector<128x32xbf16>
    %cst = arith.constant 0xFF800000 : f32
    %7 = vector.broadcast %cst : f32 to vector<128x1xf32>
    %c0_1 = arith.constant 0 : index
    %c0_2 = arith.constant 0 : index
    %8 = vector.load %arg8[%c0_1, %c0_2] : memref<128x1xf32, #tpu.memory_space<vmem>>, vector<128x1xf32>
    tpu.vector_store %arg8[%c0_1, %c0_2], %7 {strides = array<i32>} : memref<128x1xf32, #tpu.memory_space<vmem>>, vector<128x1xf32>,
    %cst_3 = arith.constant 0.000000e+00 : f32
    %9 = vector.broadcast %cst_3 : f32 to vector<128x1xf32>
    %c0_4 = arith.constant 0 : index
    %c0_5 = arith.constant 0 : index
    %10 = vector.load %arg9[%c0_4, %c0_5] : memref<128x1xf32, #tpu.memory_space<vmem>>, vector<128x1xf32>
    tpu.vector_store %arg9[%c0_4, %c0_5], %9 {strides = array<i32>} : memref<128x1xf32, #tpu.memory_space<vmem>>, vector<128x1xf32>,
    %cst_6 = arith.constant 0.000000e+00 : f32
    %11 = vector.broadcast %cst_6 : f32 to vector<128x32xf32>
    %c0_7 = arith.constant 0 : index
    %c0_8 = arith.constant 0 : index
    %12 = vector.load %arg10[%c0_7, %c0_8] : memref<128x32xf32, #tpu.memory_space<vmem>>, vector<128x32xf32>
    tpu.vector_store %arg10[%c0_7, %c0_8], %11 {strides = array<i32>} : memref<128x32xf32, #tpu.memory_space<vmem>>, vector<128x32xf32>,
    %13 = tpu.iota {dimensions = array<i32: 0>} : vector<128x1xi32>
    %14 = vector.broadcast %4 : i32 to vector<128x1xi32>
    %15 = arith.addi %14, %13 : vector<128x1xi32>
    %c1_i32 = arith.constant 1 : i32
    %16 = arith.addi %arg1, %c1_i32 : i32
    %c0_i32_9 = arith.constant 0 : i32
    %17 = arith.subi %16, %c0_i32_9 : i32
    %c1_i32_10 = arith.constant 1 : i32
    %c1_i32_11 = arith.constant 1 : i32
    %18 = arith.subi %c1_i32_10, %c1_i32_11 : i32
    %19 = arith.addi %17, %18 : i32
    %c1_i32_12 = arith.constant 1 : i32
    %20 = arith.divsi %19, %c1_i32_12 : i32
    %c1_i32_13 = arith.constant 1 : i32
    %c0_i32_14 = arith.constant 0 : i32
    %c0_i32_15 = arith.constant 0 : i32
    %21 = arith.subi %20, %c0_i32_15 : i32
    %22 = arith.addi %c0_i32_15, %21 : i32
    %c1_i32_16 = arith.constant 1 : i32
    scf.for %arg11 = %c0_i32_15 to %22 step %c1_i32_16  : i32 {
      %32 = arith.muli %arg11, %c1_i32_13 : i32
      %33 = arith.addi %c0_i32_14, %32 : i32
      %c128_i32_24 = arith.constant 128 : i32
      %34 = arith.muli %33, %c128_i32_24 : i32
      %35 = tpu.assume_multiple %34, 128 : i32
      %36 = arith.index_cast %35 : i32 to index
      %c0_25 = arith.constant 0 : index
      %37 = vector.load %arg6[%36, %c0_25] : memref<256x32xbf16, #tpu.memory_space<vmem>>, vector<128x32xbf16>
      %38 = arith.index_cast %35 : i32 to index
      %c0_26 = arith.constant 0 : index
      %39 = vector.load %arg7[%38, %c0_26] : memref<256x32xbf16, #tpu.memory_space<vmem>>, vector<128x32xbf16>
      %cst_27 = arith.constant dense<0.000000e+00> : vector<128x128xf32>
      %40 = tpu.matmul %6, %37, %cst_27 {dimension_numbers = #tpu.dot_dimension_numbers<[1], [1], [0], [0], [0, 0, 1, 0], [], []>} : vector<128x32xbf16>, vector<128x32xbf16>, vector<128x128xf32> -> vector<128x128xf32>
      %41 = tpu.iota {dimensions = array<i32: 1>} : vector<1x128xi32>
      %42 = vector.broadcast %35 : i32 to vector<1x128xi32>
      %43 = arith.addi %42, %41 : vector<1x128xi32>
      %44 = vector.broadcast %43 : vector<1x128xi32> to vector<128x128xi32>
      %45 = vector.broadcast %15 : vector<128x1xi32> to vector<128x128xi32>
      %46 = arith.cmpi sle, %44, %45 : vector<128x128xi32>
      %cst_28 = arith.constant 0xFF800000 : f32
      %47 = vector.broadcast %cst_28 : f32 to vector<128x128xf32>
      %48 = arith.select %46, %40, %47 : vector<128x128xi1>, vector<128x128xf32>
      %c0_29 = arith.constant 0 : index
      %c0_30 = arith.constant 0 : index
      %49 = vector.load %arg8[%c0_29, %c0_30] : memref<128x1xf32, #tpu.memory_space<vmem>>, vector<128x1xf32>
      %cst_31 = arith.constant dense<0xFF800000> : vector<128xf32>
      %50 = vector.multi_reduction <maximumf>, %48, %cst_31 [1] : vector<128x128xf32> to vector<128xf32>
      %51 = vector.shape_cast %50 : vector<128xf32> to vector<128x1xf32>
      %52 = arith.maximumf %49, %51 : vector<128x1xf32>
      %53 = arith.subf %49, %52 : vector<128x1xf32>
      %54 = math.exp %53 : vector<128x1xf32>
      %55 = vector.broadcast %52 : vector<128x1xf32> to vector<128x128xf32>
      %56 = arith.subf %48, %55 : vector<128x128xf32>
      %57 = math.exp %56 : vector<128x128xf32>
      %c0_32 = arith.constant 0 : index
      %c0_33 = arith.constant 0 : index
      %58 = vector.load %arg9[%c0_32, %c0_33] : memref<128x1xf32, #tpu.memory_space<vmem>>, vector<128x1xf32>
      %59 = arith.mulf %54, %58 : vector<128x1xf32>
      %cst_34 = arith.constant dense<0.000000e+00> : vector<128xf32>
      %60 = vector.multi_reduction <add>, %57, %cst_34 [1] : vector<128x128xf32> to vector<128xf32>
      %61 = vector.shape_cast %60 : vector<128xf32> to vector<128x1xf32>
      %62 = arith.addf %59, %61 : vector<128x1xf32>
      %c0_35 = arith.constant 0 : index
      %c0_36 = arith.constant 0 : index
      %63 = vector.load %arg9[%c0_35, %c0_36] : memref<128x1xf32, #tpu.memory_space<vmem>>, vector<128x1xf32>
      tpu.vector_store %arg9[%c0_35, %c0_36], %62 {strides = array<i32>} : memref<128x1xf32, #tpu.memory_space<vmem>>, vector<128x1xf32>,
      %c0_37 = arith.constant 0 : index
      %c0_38 = arith.constant 0 : index
      %64 = vector.load %arg10[%c0_37, %c0_38] : memref<128x32xf32, #tpu.memory_space<vmem>>, vector<128x32xf32>
      %65 = vector.broadcast %54 : vector<128x1xf32> to vector<128x32xf32>
      %66 = arith.mulf %65, %64 : vector<128x32xf32>
      %67 = arith.truncf %57 : vector<128x128xf32> to vector<128x128xbf16>
      %cst_39 = arith.constant dense<0.000000e+00> : vector<128x32xf32>
      %68 = tpu.matmul %67, %39, %cst_39 {dimension_numbers = #tpu.dot_dimension_numbers<[1], [0], [0], [1], [0, 0, 1, 1], [], []>} : vector<128x128xbf16>, vector<128x32xbf16>, vector<128x32xf32> -> vector<128x32xf32>
      %69 = arith.addf %66, %68 : vector<128x32xf32>
      %c0_40 = arith.constant 0 : index
      %c0_41 = arith.constant 0 : index
      %70 = vector.load %arg10[%c0_40, %c0_41] : memref<128x32xf32, #tpu.memory_space<vmem>>, vector<128x32xf32>
      tpu.vector_store %arg10[%c0_40, %c0_41], %69 {strides = array<i32>} : memref<128x32xf32, #tpu.memory_space<vmem>>, vector<128x32xf32>,
      %c0_42 = arith.constant 0 : index
      %c0_43 = arith.constant 0 : index
      %71 = vector.load %arg8[%c0_42, %c0_43] : memref<128x1xf32, #tpu.memory_space<vmem>>, vector<128x1xf32>
      tpu.vector_store %arg8[%c0_42, %c0_43], %52 {strides = array<i32>} : memref<128x1xf32, #tpu.memory_space<vmem>>, vector<128x1xf32>,
    }
    %c0_17 = arith.constant 0 : index
    %c0_18 = arith.constant 0 : index
    %23 = vector.load %arg10[%c0_17, %c0_18] : memref<128x32xf32, #tpu.memory_space<vmem>>, vector<128x32xf32>
    %c0_19 = arith.constant 0 : index
    %c0_20 = arith.constant 0 : index
    %24 = vector.load %arg9[%c0_19, %c0_20] : memref<128x1xf32, #tpu.memory_space<vmem>>, vector<128x1xf32>
    %25 = tpu.reciprocal %24 {approx = true} : vector<128x1xf32> -> vector<128x1xf32>
    %26 = vector.broadcast %25 : vector<128x1xf32> to vector<128x32xf32>
    %27 = arith.mulf %23, %26 : vector<128x32xf32>
    %28 = arith.truncf %27 : vector<128x32xf32> to vector<128x32xbf16>
    %c0_21 = arith.constant 0 : index
    %c0_22 = arith.constant 0 : index
    %c0_23 = arith.constant 0 : index
    %29 = vector.load %arg4[%c0_21, %c0_22, %c0_23] : memref<1x128x32xbf16, #tpu.memory_space<vmem>>, vector<1x128x32xbf16>
    %30 = vector.shape_cast %29 : vector<1x128x32xbf16> to vector<128x32xbf16>
    %31 = vector.shape_cast %28 : vector<128x32xbf16> to vector<1x128x32xbf16>
    tpu.vector_store %arg4[%c0_21, %c0_22, %c0_23], %31 {strides = array<i32>} : memref<1x128x32xbf16, #tpu.memory_space<vmem>>, vector<1x128x32xbf16>,
    return
  }
  func.func @transform_0(%arg0: i32, %arg1: i32) -> (i32, i32, i32) {
    %c0_i32 = arith.constant 0 : i32
    %c0_i32_0 = arith.constant 0 : i32
    %c0_i32_1 = arith.constant 0 : i32
    return %arg0, %c0_i32, %c0_i32_0 : i32, i32, i32
  }
  func.func @transform_1(%arg0: i32, %arg1: i32) -> (i32, i32) {
    %c0_i32 = arith.constant 0 : i32
    %c0_i32_0 = arith.constant 0 : i32
    %c0_i32_1 = arith.constant 0 : i32
    return %c0_i32, %c0_i32_0 : i32, i32
  }
  func.func @transform_2(%arg0: i32, %arg1: i32) -> (i32, i32, i32) {
    %c0_i32 = arith.constant 0 : i32
    %c0_i32_0 = arith.constant 0 : i32
    return %arg0, %arg1, %c0_i32 : i32, i32, i32
  }
}

</mosaic_0001>

<bundles_post_ra>
// kernel: tpu_custom_call.1
= control target key start
LH: loop header
LB: loop body
LE: loop exit
PB: predicated region body
PF: predicated region fallthrough
CT: control target
= control target key end

     0   :  { %7 = vsyncpa [#allocation9], 0  ;;  %s4265_s0 = inlined_call_operand.hbm [shape: bf16[2,256,384], index: 0, kind: input, shape index: {}]   ;;  %s4266_s1 = inlined_call_operand.vmem [shape: bf16[384,96], index: 1, kind: input, shape index: {}]   ;;  %s4267_s2 = inlined_call_operand.vmem [shape: bf16[2,256,32], index: 2, kind: output, shape index: {}]  }
   0x1   :  { %9 = vsyncpa [#allocation9 + $0x1], 0  ;;  %s3285_s9 = smov 0   ;;  %s3287_s10 = smov 0  }
   0x2   :  { %s3289_s11 = smov 0   ;;  %s3291_s12 = smov 0  }
   0x3   :  { %s3293_s13 = smov 0   ;;  %s3295_s14 = smov 0  }
   0x4   :  { %s3297_s15 = smov 0   ;;  %s3299_s16 = smov 0  }
   0x5 LB: > { %s2443_s17 = sadd.s32 4294967295, %s3255_s16   ;;  %s24_s18 = sadd.s32 1, %s3247_s14  ;;  %s3255_s16 = sphi %s3299_s16, %s15_s16   ;;  %s3251_s15 = sphi %s3297_s15, %s4302_s15   ;;  %s3247_s14 = sphi %s3295_s14, %s4301_s14   ;;  %s3243_s13 = sphi %s3293_s13, %s4300_s13   ;;  %s3239_s12 = sphi %s3291_s12, %s4299_s12   ;;  %s3235_s11 = sphi %s3289_s11, %s4298_s11   ;;  %s3231_s10 = sphi %s3287_s10, %s4297_s10   ;;  %s3227_s9 = sphi %s3285_s9, %s4296_s9  }
   0x6   : > { %p25_p0 = scmp.ge.s32.totalorder %s24_s18, 2  ;;  %s27_s19 = sadd.s32 1, %s3251_s15 }
   0x7   : > { %s34_s20 = sadd.s32 1, %s3235_s11  ;;  %p41_p1 = scmp.ne.s32.totalorder %s3235_s11, %s3231_s10 }
   0x8   : > { %s4304_s18 = smov (%p25_p0, %s24_s18), 0  ;;  %s4306_s19 = smov (!%p25_p0, %s27_s19), %s3251_s15 }
   0x9   : > { %p42_p2 = scmp.eq.s32.totalorder %s3255_s16, 0  ;;  %p47_p3 = scmp.ne.s32.totalorder %s3231_s10, %s3227_s9 }
   0xa   : > { %p29_p4 = scmp.ge.s32.totalorder %s4306_s19, 2  ;;  %p48_p5 = scmp.eq.s32.totalorder %s2443_s17, 0 }
   0xb   : > { %p43_p6 = por %p42_p2, %p41_p1  ;;  %p2886_p8 = scmp.lt.s32.totalorder %s3255_s16, 4 }
   0xc   : > { %s4308_s19 = smov (%p29_p4, %s4306_s19), 0  ;;  %p3336_p7 = por %p48_p5, %p47_p3 }
   0xd   : > { %s31_s22 = ssub.s32 %s3251_s15, %s4308_s19  ;;  %s123_s23 = sand.u32 1, %s3235_s11  }
   0xe   : > { %p32_p9 = scmp.eq.s32.totalorder %s31_s22, 0  ;;  %s2877_s24 = smul.u32 384, %s123_s23 }
   0xf   : > { %p3344_p10 = pnand %p2886_p8, %p43_p6  ;;  %s2878_s27 = smul.u32 6144, %s3251_s15 }
  0x10   : > { %s3349_s26 = scalar_select %p32_p9, %s3235_s11, %s34_s20  }
  0x11   : > { %s127_s28 = scalar_lea.vmem [#allocation8], %s2877_s24  ;;  %s3355_s4 = scalar_lea.hbm %s4265_s0, %s2878_s27 }
  0x12   : > { %s134_s29 = sshll.u32 %s127_s28, 4  ;;  %s3359_s5 = scalar_lea.sflag [#allocation9], %s123_s23  ;;  %s3357_s29 = int_to_ptr.vmem [resolvable:$true] %s134_s29 }
  0x13   : > { %s3155_s6 = scalar_lea.hbm %s3355_s4, 6144  ;;  %p3157_p12 = pneg %p3344_p10 }
  0x14   : > { %p3156_p11 = scmp.ne.s32.totalorder %s3355_s4, %s3155_s6  ;;  %s3160_s9 = scalar_lea.hbm %s4265_s0, 12288 }
  0x15   : > { %p3161_p1 = scmp.lt.u32.totalorder %s3355_s4, %s4265_s0  ;;  %p3162_p2 = scmp.lt.u32.totalorder %s3160_s9, %s3155_s6 }
  0x16   : > { %p3158_p13 = pnand %p3157_p12, %p3156_p11  ;;  %p3164_p4 = scmp.lt.u32.totalorder %s3155_s6, %s3355_s4 }
  0x17   : > { %p3163_p3 = por %p3162_p2, %p3161_p1 }
  0x18   : > { %p3159_p0 = pneg %p3158_p13 }
  0x19   : > { %p3165_p5 = por %p3164_p4, %p3163_p3 }
  0x1b   : > { %p3166_p6 = pnand %p3165_p5, %p3159_p0 }
  0x1d   : > { %3169 = shalt.err (!%p3166_p6)
}
  0x1e   : > { %s3170_s22 = scalar_lea.vmem %s3357_s29, 6144  ;;  %s3261_s23 = smov [#allocation8]  }
  0x1f   : > { %p3171_p8 = scmp.ne.s32.totalorder %s3357_s29, %s3170_s22  ;;  %s3175_s24 = sshll.u32 %s3261_s23, 4  ;;  %s3176_s24 = int_to_ptr.vmem [resolvable:$false] %s3175_s24 }
  0x20   : > { %s3177_s27 = scalar_lea.vmem %s3176_s24, 12288  ;;  %p3178_p13 = scmp.lt.s32.totalorder %s3357_s29, %s3176_s24 }
  0x21   : > { %p3173_p9 = pnand %p3171_p8, %p3157_p12  ;;  %p3179_p1 = scmp.lt.s32.totalorder %s3177_s27, %s3170_s22 }
  0x23   : > { %p3174_p11 = pneg %p3173_p9  ;;  %p3180_p2 = por %p3179_p1, %p3178_p13 }
  0x25   : > { %p3181_p3 = pnand %p3180_p2, %p3174_p11 }
  0x27   : > { %3184 = shalt.err (!%p3181_p3)
}
  0x28   : > { %s3262_s28 = smov 192   ;;  %s3263_s30 = smov 12  }
  0x29   : > { %2885 = dma.hbm_to_vmem [thread:$0]  (!%p3344_p10), %s3355_s4, 6144, %s3357_s29, %s3359_s5, %s3262_s28, %s3262_s28, %s3263_s30  }
  0x2a   : > { %p2448_p12 = scmp.ge.s32.totalorder %s3255_s16, 1  ;;  %p142_p0 = scmp.lt.s32.totalorder %s3255_s16, 5 }
  0x2c   : > { %p143_p4 = pnand %p2448_p12, %p142_p0 }
  0x2e   : > { %146 = sbr.rel (%p143_p4) target bundleno = 1565 (0x61d), region = 28 }
  0x35   : > { %s148_s3 = sand.u32 1, %s3231_s10  }
  0x36   : > { %s2879_s6 = smul.u32 384, %s148_s3  ;;  %s149_s7 = scalar_lea.sflag [#allocation9], %s148_s3 }
  0x38   : > { %s3390_s8 = scalar_lea.vmem [#allocation8], %s2879_s6 }
  0x39   : > { %3222 = dma.done.wait (%p3336_p7), %s149_s7, 6144  }
  0x3a   : > { %3224 = vsyncadd (%p3336_p7), %s149_s7, 4294961152  ;;  %s2449_s25 = sshll.u32 %s3239_s12, 4  ;;  %p178_p10 = scmp.lt.s32.totalorder %s3243_s13, 1 }
  0x3b   : > { %p180_p5 = scmp.lt.s32.totalorder %s2449_s25, 31  ;;  %p2452_p6 = scmp.ne.s32.totalorder %s3239_s12, 0 }
  0x3c   : > { %s4310_s13 = smov (!%p178_p10, %s3243_s13), 1  ;;  %v2967_v0 = vld [vmem:[%s4266_s1 + $0x40] sm:$0xff] (!%p2452_p6)   ;;  %v2969_v2 = vld [vmem:[%s4266_s1 + $0x48] sm:$0xff] (!%p2452_p6)   ;;  %v2971_v4 = vld [vmem:[%s4266_s1 + $0x50] sm:$0xff] (!%p2452_p6)   ;;  %vm1042_vm0 = vcmask (!%p2452_p6), 261120  }
  0x3d   : > { %s4312_s25 = smov (!%p180_p5, %s2449_s25), 31  ;;  %s2450_s29 = sshll.u32 %s4310_s13, 5  ;;  %v2968_v1 = vld [vmem:[%s4266_s1] sm:$0xff] (!%p2452_p6)   ;;  %2573 = vmatprep.subr.bf16.mxu0 (!%p2452_p6), %v2967_v0  ;;  %2853 = vmatprep.subr.bf16.mxu1 (!%p2452_p6), %v2967_v0  ;;  %v2970_v3 = vld [vmem:[%s4266_s1 + $0x8] sm:$0xff] (!%p2452_p6)   ;;  %v2972_v5 = vld [vmem:[%s4266_s1 + $0x10] sm:$0xff] (!%p2452_p6)  }
  0x3e   : > { %s183_s4 = sadd.s32 %s2450_s29, %s4312_s25  ;;  %191 = sbr.rel (%p2452_p6) target bundleno = 530 (0x212), region = 36  ;;  %2574 = vmatpush3.bf16.msra.mxu0 (!%p2452_p6), %v2968_v1  ;;  %2861 = vmatpush3.bf16.msra.mxu1 (!%p2452_p6), %v2968_v1  ;;  %v2973_v6 = vld [vmem:[%s4266_s1 + $0x58] sm:$0xff] (!%p2452_p6)   ;;  %v2975_v8 = vld [vmem:[%s4266_s1 + $0x60] sm:$0xff] (!%p2452_p6)   ;;  %v2977_v10 = vld [vmem:[%s4266_s1 + $0x68] sm:$0xff] (!%p2452_p6)  }
  0x3f   : > { %s2451_s5 = sshll.u32 %s183_s4, 2  ;;  %2575 = vmatprep.subr.bf16.mxu0 (!%p2452_p6), %v2969_v2  ;;  %2854 = vmatprep.subr.bf16.mxu1 (!%p2452_p6), %v2969_v2  ;;  %v2974_v7 = vld [vmem:[%s4266_s1 + $0x18] sm:$0xff] (!%p2452_p6)   ;;  %v2976_v9 = vld [vmem:[%s4266_s1 + $0x20] sm:$0xff] (!%p2452_p6)   ;;  %v2978_v13 = vld [vmem:[%s4266_s1 + $0x28] sm:$0xff] (!%p2452_p6)  }
  0x40   : > { %s3402_s20 = scalar_lea.vmem %s4267_s2, %s2451_s5  ;;  %v2985_v11 = vld [vmem:[%s3390_s8 + $0x4] ss:$12 sps:$4 sm:$0xff] (!%p2452_p6)   ;;  %v2981_v16 = vld [vmem:[%s4266_s1 + $0x78] sm:$0xff] (!%p2452_p6)   ;;  %v2983_v19 = vld [vmem:[%s3390_s8] ss:$12 sps:$4 sm:$0xff] (!%p2452_p6)   ;;  %s3265_s5 = smov (!%p2452_p6), 96  }
  0x41   : > { %v2988_v12 = vld [vmem:[%s3390_s8 + $0x124] ss:$12 sps:$4 sm:$0xff] (!%p2452_p6)   ;;  %736 = vmatprep.mubr.bf16.mxu0 (!%p2452_p6), %v2985_v11  ;;  %v2982_v17 = vld [vmem:[%s4266_s1 + $0x38] sm:$0xff] (!%p2452_p6)   ;;  %v2986_v20 = vld [vmem:[%s3390_s8 + $0x120] ss:$12 sps:$4 sm:$0xff] (!%p2452_p6)  }
  0x42   : > { %2576 = vmatpush3.bf16.msra.mxu0 (!%p2452_p6), %v2970_v3  ;;  %2862 = vmatpush3.bf16.msra.mxu1 (!%p2452_p6), %v2970_v3  ;;  %v2979_v14 = vld [vmem:[%s4266_s1 + $0x70] sm:$0xff] (!%p2452_p6)   ;;  %v2989_v18 = vld [vmem:[%s4266_s1 + $0x80] sm:$0xff] (!%p2452_p6)   ;;  %v2991_v21 = vld [vmem:[%s3390_s8 + $0x1c] ss:$12 sps:$4 sm:$0xff] (!%p2452_p6)  }
  0x43   : > { %2577 = vmatprep.subr.bf16.mxu0 (!%p2452_p6), %v2971_v4  ;;  %2855 = vmatprep.subr.bf16.mxu1 (!%p2452_p6), %v2971_v4  ;;  %v2980_v15 = vld [vmem:[%s4266_s1 + $0x30] sm:$0xff] (!%p2452_p6)   ;;  %v2990_v22 = vld [vmem:[%s4266_s1 + $0x88] sm:$0xff] (!%p2452_p6)   ;;  %v2995_v24 = vld [vmem:[%s3390_s8 + $0x18] ss:$12 sps:$4 sm:$0xff] (!%p2452_p6)  }
  0x44   : > { %832 = vmatprep.mubr.bf16.mxu1 (!%p2452_p6), %v2988_v12  ;;  %v2993_v23 = vld [vmem:[%s3390_s8 + $0x13c] ss:$12 sps:$4 sm:$0xff] (!%p2452_p6)   ;;  %v2997_v25 = vld [vmem:[%s4266_s1 + $0x90] sm:$0xff] (!%p2452_p6)   ;;  %v2996_v26 = vld [vmem:[%s3390_s8 + $0x138] ss:$12 sps:$4 sm:$0xff] (!%p2452_p6)  }
  0x45   : > { %v2998_v27 = vld [vmem:[%s4266_s1 + $0x98] sm:$0xff]   ;;  %v2999_v28 = vld [vmem:[%s3390_s8 + $0x34] ss:$12 sps:$4 sm:$0xff]   ;;  %v3006_v33 = vld [vmem:[%s4266_s1 + $0xa8] sm:$0xff]  }
  0x46   : > { %2578 = vmatpush3.bf16.msra.mxu0 %v2972_v5  ;;  %2863 = vmatpush3.bf16.msra.mxu1 %v2972_v5  ;;  %v3001_v29 = vld [vmem:[%s3390_s8 + $0x154] ss:$12 sps:$4 sm:$0xff]   ;;  %v3003_v31 = vld [vmem:[%s3390_s8 + $0x30] ss:$12 sps:$4 sm:$0xff]   ;;  %v3007_v34 = vld [vmem:[%s3390_s8 + $0x4c] ss:$12 sps:$4 sm:$0xff]  }
  0x47   : > { %2579 = vmatprep.subr.bf16.mxu0 %v2973_v6  ;;  %2856 = vmatprep.subr.bf16.mxu1 %v2973_v6  ;;  %v3005_v30 = vld [vmem:[%s4266_s1 + $0xa0] sm:$0xff]   ;;  %v3004_v32 = vld [vmem:[%s3390_s8 + $0x150] ss:$12 sps:$4 sm:$0xff]   ;;  %v3009_v35 = vld [vmem:[%s3390_s8 + $0x16c] ss:$12 sps:$4 sm:$0xff]  }
  0x48   : > { %v3013_v36 = vld [vmem:[%s4266_s1 + $0xb0] sm:$0xff]   ;;  %v3014_v40 = vld [vmem:[%s4266_s1 + $0xb8] sm:$0xff]   ;;  %v3018_v42 = vld [vmem:[%s3390_s8 + $0x60] ss:$12 sps:$4 sm:$0xff]  }
  0x49   : > { %v3011_v37 = vld [vmem:[%s3390_s8 + $0x48] ss:$12 sps:$4 sm:$0xff]   ;;  %v3015_v39 = vld [vmem:[%s3390_s8 + $0x64] ss:$12 sps:$4 sm:$0xff]   ;;  %v3019_v43 = vld [vmem:[%s3390_s8 + $0x20] ss:$12 sps:$4 sm:$0xff]  }
  0x4a   : > { %2580 = vmatpush3.bf16.msra.mxu0 %v2974_v7  ;;  %2864 = vmatpush3.bf16.msra.mxu1 %v2974_v7  ;;  %v3012_v38 = vld [vmem:[%s3390_s8 + $0x168] ss:$12 sps:$4 sm:$0xff]   ;;  %v3022_v45 = vld [vmem:[%s3390_s8 + $0x38] ss:$12 sps:$4 sm:$0xff]   ;;  %v3024_v47 = vld [vmem:[%s3390_s8 + $0x50] ss:$12 sps:$4 sm:$0xff]  }
  0x4b   : > { %2581 = vmatprep.subr.bf16.mxu0 %v2975_v8  ;;  %2857 = vmatprep.subr.bf16.mxu1 %v2975_v8  ;;  %v3017_v41 = vld [vmem:[%s3390_s8 + $0x8] ss:$12 sps:$4 sm:$0xff]   ;;  %v3023_v46 = vld [vmem:[%s3390_s8 + $0x78] ss:$12 sps:$4 sm:$0xff]   ;;  %v3028_v50 = vld [vmem:[%s3390_s8 + $0x90] ss:$12 sps:$4 sm:$0xff]  }
  0x4c   : > { %v3020_v44 = vld [vmem:[%s3390_s8 + $0x7c] ss:$12 sps:$4 sm:$0xff]   ;;  %v3025_v48 = vld [vmem:[%s3390_s8 + $0x94] ss:$12 sps:$4 sm:$0xff]   ;;  %v3030_v52 = vld [vmem:[%s3390_s8 + $0xac] ss:$12 sps:$4 sm:$0xff]  }
  0x4d   : > { %v3027_v49 = vld [vmem:[%s3390_s8 + $0x68] ss:$12 sps:$4 sm:$0xff]   ;;  %v3029_v51 = vld [vmem:[%s3390_s8 + $0x80] ss:$12 sps:$4 sm:$0xff]   ;;  %v3032_v53 = vld [vmem:[%s3390_s8 + $0x98] ss:$12 sps:$4 sm:$0xff]  }
  0x4e   : > { %2582 = vmatpush3.bf16.msra.mxu0 %v2976_v9  ;;  %2865 = vmatpush3.bf16.msra.mxu1 %v2976_v9  ;;  %v3033_v54 = vld [vmem:[%s3390_s8 + $0xa8] ss:$12 sps:$4 sm:$0xff]   ;;  %v3034_v55 = vld [vmem:[%s3390_s8 + $0xb0] ss:$12 sps:$4 sm:$0xff]   ;;  %v3038_v58 = vld [vmem:[%s3390_s8 + $0xc0] ss:$12 sps:$4 sm:$0xff]  }
  0x4f   : > { %2583 = vmatprep.subr.bf16.mxu0 %v2977_v10  ;;  %2858 = vmatprep.subr.bf16.mxu1 %v2977_v10  ;;  %v3035_v56 = vld [vmem:[%s3390_s8 + $0xc4] ss:$12 sps:$4 sm:$0xff]   ;;  %v3037_v57 = vld [vmem:[%s3390_s8 + $0xc8] ss:$12 sps:$4 sm:$0xff]   ;;  %v3039_v59 = vld [vmem:[%s3390_s8 + $0xe0] ss:$12 sps:$4 sm:$0xff]  }
  0x50   : > { %v3040_v60 = vld [vmem:[%s3390_s8 + $0xdc] ss:$12 sps:$4 sm:$0xff]   ;;  %v3042_v61 = vld [vmem:[%s3390_s8 + $0xf8] ss:$12 sps:$4 sm:$0xff]   ;;  %v3045_v0 = vld [vmem:[%s3390_s8 + $0xf4] ss:$12 sps:$4 sm:$0xff]  }
  0x51   : > { %v3043_v62 = vld [vmem:[%s3390_s8 + $0xd8] ss:$12 sps:$4 sm:$0xff]   ;;  %v3044_v63 = vld [vmem:[%s3390_s8 + $0x110] ss:$12 sps:$4 sm:$0xff]   ;;  %v3047_v1 = vld [vmem:[%s3390_s8 + $0x128] ss:$12 sps:$4 sm:$0xff]  }
  0x52   : > { %2584 = vmatpush3.bf16.msra.mxu0 %v2978_v13  ;;  %2866 = vmatpush3.bf16.msra.mxu1 %v2978_v13  ;;  %v3048_v2 = vld [vmem:[%s3390_s8 + $0xf0] ss:$12 sps:$4 sm:$0xff]   ;;  %v3049_v3 = vld [vmem:[%s3390_s8 + $0x140] ss:$12 sps:$4 sm:$0xff]   ;;  %v3052_v5 = vld [vmem:[%s3390_s8 + $0x158] ss:$12 sps:$4 sm:$0xff]  }
  0x53   : > { %2585 = vmatprep.subr.bf16.mxu0 %v2979_v14  ;;  %2859 = vmatprep.subr.bf16.mxu1 %v2979_v14  ;;  %v3050_v4 = vld [vmem:[%s3390_s8 + $0x10c] ss:$12 sps:$4 sm:$0xff]   ;;  %v3053_v6 = vld [vmem:[%s3390_s8 + $0x108] ss:$12 sps:$4 sm:$0xff]   ;;  %v3054_v7 = vld [vmem:[%s3390_s8 + $0x170] ss:$12 sps:$4 sm:$0xff]  }
  0x54   : > { %s3264_s8 = smov 64  }
  0x56   : > { %2586 = vmatpush3.bf16.msra.mxu0 %v2980_v15  ;;  %2867 = vmatpush3.bf16.msra.mxu1 %v2980_v15 }
  0x57   : > { %2587 = vmatprep.subr.bf16.mxu0 %v2981_v16  ;;  %2860 = vmatprep.subr.bf16.mxu1 %v2981_v16 }
  0x5a   : > { %2588 = vmatpush3.bf16.msra.mxu0 %v2982_v17  ;;  %2868 = vmatpush3.bf16.msra.mxu1 %v2982_v17 }
  0x5b   : > { %2741 = vmatprep.subr.bf16.mxu1 %v2989_v18 }
  0x5d   : > { %737 = vmatmul.mubr.bf16.vlgmr.msra.gmra.mrb[0].mxu0 %v2983_v19  ;;  %833 = vmatmul.mubr.bf16.vlgmr.msra.gmra.mrb[0].mxu1 %v2986_v20 }
  0x5e   : > { %2742 = vmatpush3.bf16.msra.mxu1 %v2989_v18  ;;  %744 = vmatprep.mubr.bf16.mxu0 %v2991_v21 }
  0x5f   : > { %2743 = vmatprep.subr.bf16.mxu1 %v2990_v22  ;;  %840 = vmatprep.mubr.bf16.mxu1 %v2993_v23 }
  0x62   : > { %2744 = vmatpush3.bf16.msra.mxu1 %v2990_v22 }
  0x63   : > { %2745 = vmatprep.subr.bf16.mxu1 %v2997_v25 }
  0x65   : > { %745 = vmatmul.mubr.bf16.gmra.mrb[4].mxu0 %v2995_v24  ;;  %841 = vmatmul.mubr.bf16.gmra.mrb[4].mxu1 %v2996_v26 }
  0x66   : > { %2746 = vmatpush3.bf16.msra.mxu1 %v2997_v25  ;;  %752 = vmatprep.mubr.bf16.mxu0 %v2999_v28 }
  0x67   : > { %2747 = vmatprep.subr.bf16.mxu1 %v2998_v27  ;;  %848 = vmatprep.mubr.bf16.mxu1 %v3001_v29 }
  0x6a   : > { %2748 = vmatpush3.bf16.msra.mxu1 %v2998_v27 }
  0x6b   : > { %2749 = vmatprep.subr.bf16.mxu1 %v3005_v30 }
  0x6d   : > { %753 = vmatmul.mubr.bf16.gmra.mrb[8].mxu0 %v3003_v31  ;;  %849 = vmatmul.mubr.bf16.gmra.mrb[8].mxu1 %v3004_v32 }
  0x6e   : > { %2750 = vmatpush3.bf16.msra.mxu1 %v3005_v30  ;;  %760 = vmatprep.mubr.bf16.mxu0 %v3007_v34 }
  0x6f   : > { %2751 = vmatprep.subr.bf16.mxu1 %v3006_v33  ;;  %856 = vmatprep.mubr.bf16.mxu1 %v3009_v35 }
  0x72   : > { %2752 = vmatpush3.bf16.msra.mxu1 %v3006_v33 }
  0x73   : > { %2753 = vmatprep.subr.bf16.mxu1 %v3013_v36 }
  0x75   : > { %761 = vmatmul.mubr.bf16.gmra.mrb[12].mxu0 %v3011_v37  ;;  %857 = vmatmul.mubr.bf16.gmra.mrb[12].mxu1 %v3012_v38 }
  0x76   : > { %2754 = vmatpush3.bf16.msra.mxu1 %v3013_v36  ;;  %768 = vmatprep.mubr.bf16.mxu0 %v3015_v39 }
  0x77   : > { %2755 = vmatprep.subr.bf16.mxu1 %v3014_v40  ;;  %2757 = vmatprep.mubr.bf16.mxu1 %v3017_v41 }
  0x7a   : > { %2756 = vmatpush3.bf16.msra.mxu1 %v3014_v40 }
  0x7d   : > { %769 = vmatmul.mubr.bf16.gmra.mrb[16].mxu0 %v3018_v42  ;;  %2758 = vmatmul.mubr.bf16.vlgmr.msra.gmra.mrb[16].mxu1 %v3019_v43 }
  0x7e   : > { %776 = vmatprep.mubr.bf16.mxu0 %v3020_v44  ;;  %2761 = vmatprep.mubr.bf16.mxu1 %v3022_v45 }
  0x85   : > { %777 = vmatmul.mubr.bf16.gmra.mrb[20].mxu0 %v3023_v46  ;;  %2762 = vmatmul.mubr.bf16.gmra.mrb[20].mxu1 %v3024_v47 }
  0x86   : > { %784 = vmatprep.mubr.bf16.mxu0 %v3025_v48  ;;  %2765 = vmatprep.mubr.bf16.mxu1 %v3027_v49 }
  0x8d   : > { %785 = vmatmul.mubr.bf16.gmra.mrb[24].mxu0 %v3028_v50  ;;  %2766 = vmatmul.mubr.bf16.gmra.mrb[24].mxu1 %v3029_v51 }
  0x8e   : > { %792 = vmatprep.mubr.bf16.mxu0 %v3030_v52  ;;  %2769 = vmatprep.mubr.bf16.mxu1 %v3032_v53 }
  0x95   : > { %793 = vmatmul.mubr.bf16.gmra.mrb[28].mxu0 %v3033_v54  ;;  %2770 = vmatmul.mubr.bf16.gmra.mrb[28].mxu1 %v3034_v55 }
  0x96   : > { %800 = vmatprep.mubr.bf16.mxu0 %v3035_v56  ;;  %2773 = vmatprep.mubr.bf16.mxu1 %v3037_v57 }
  0x9d   : > { %801 = vmatmul.mubr.bf16.gmra.mrb[32].mxu0 %v3038_v58  ;;  %2774 = vmatmul.mubr.bf16.gmra.mrb[32].mxu1 %v3039_v59 }
  0x9e   : > { %808 = vmatprep.mubr.bf16.mxu0 %v3040_v60  ;;  %2777 = vmatprep.mubr.bf16.mxu1 %v3042_v61 }
  0xa5   : > { %809 = vmatmul.mubr.bf16.gmra.mrb[36].mxu0 %v3043_v62  ;;  %2778 = vmatmul.mubr.bf16.gmra.mrb[36].mxu1 %v3044_v63 }
  0xa6   : > { %816 = vmatprep.mubr.bf16.mxu0 %v3045_v0  ;;  %2781 = vmatprep.mubr.bf16.mxu1 %v3047_v1 }
  0xad   : > { %817 = vmatmul.mubr.bf16.gmra.mrb[40].mxu0 %v3048_v2  ;;  %2782 = vmatmul.mubr.bf16.gmra.mrb[40].mxu1 %v3049_v3 }
  0xae   : > { %824 = vmatprep.mubr.bf16.mxu0 %v3050_v4  ;;  %2785 = vmatprep.mubr.bf16.mxu1 %v3052_v5 }
  0xb5   : > { %825 = vmatmul.mubr.bf16.gmra.mrb[44].mxu0 %v3053_v6  ;;  %2786 = vmatmul.mubr.bf16.gmra.mrb[44].mxu1 %v3054_v7 }
 0x130   : > { %v2589_v8 = vpop.f32.mrb[0].mxu0  ;;  %v2661_v9 = vpop.f32.mrb[0].mxu1 }
 0x131   : > { %v2590_v10 = vpop.f32.mrb[1].mxu0  ;;  %v2662_v11 = vpop.f32.mrb[1].mxu1 }
 0x132   : > { %v2591_v12 = vadd.f32 %v2590_v10, %v2589_v8  ;;  %v3525_v13 = vadd.f32 %v2662_v11, %v2661_v9  ;;  %v2592_v14 = vpop.f32.mrb[2].mxu0  ;;  %v2664_v15 = vpop.f32.mrb[2].mxu1 }
 0x133   : > { %v2593_v16 = vpop.f32.mrb[3].mxu0  ;;  %v2665_v17 = vpop.f32.mrb[3].mxu1 }
 0x134   : > { %v2594_v18 = vadd.f32 %v2593_v16, %v2592_v14  ;;  %v3527_v19 = vadd.f32 %v2665_v17, %v2664_v15 }
 0x138   : > { %v2595_v20 = vpop.f32.mrb[4].mxu0  ;;  %v2667_v21 = vpop.f32.mrb[4].mxu1 }
 0x139   : > { %v2596_v22 = vpop.f32.mrb[5].mxu0  ;;  %v2668_v23 = vpop.f32.mrb[5].mxu1 }
 0x13a   : > { %v2597_v24 = vadd.f32 %v2596_v22, %v2595_v20  ;;  %v3529_v25 = vadd.f32 %v2668_v23, %v2667_v21  ;;  %v2598_v26 = vpop.f32.mrb[6].mxu0  ;;  %v2670_v27 = vpop.f32.mrb[6].mxu1 }
 0x13b   : > { %v2599_v28 = vpop.f32.mrb[7].mxu0  ;;  %v2671_v29 = vpop.f32.mrb[7].mxu1 }
 0x13c   : > { %v2600_v30 = vadd.f32 %v2599_v28, %v2598_v26  ;;  %v3531_v31 = vadd.f32 %v2671_v29, %v2670_v27 }
 0x140   : > { %v2601_v32 = vpop.f32.mrb[8].mxu0  ;;  %v2673_v33 = vpop.f32.mrb[8].mxu1 }
 0x141   : > { %v2602_v34 = vpop.f32.mrb[9].mxu0  ;;  %v2674_v35 = vpop.f32.mrb[9].mxu1 }
 0x142   : > { %v2603_v36 = vadd.f32 %v2602_v34, %v2601_v32  ;;  %v3533_v37 = vadd.f32 %v2674_v35, %v2673_v33  ;;  %v2604_v38 = vpop.f32.mrb[10].mxu0  ;;  %v2676_v39 = vpop.f32.mrb[10].mxu1 }
 0x143   : > { %v2605_v40 = vpop.f32.mrb[11].mxu0  ;;  %v2677_v41 = vpop.f32.mrb[11].mxu1 }
 0x144   : > { %v2606_v42 = vadd.f32 %v2605_v40, %v2604_v38  ;;  %v3535_v43 = vadd.f32 %v2677_v41, %v2676_v39 }
 0x148   : > { %v2607_v44 = vpop.f32.mrb[12].mxu0  ;;  %v2679_v45 = vpop.f32.mrb[12].mxu1 }
 0x149   : > { %v2608_v46 = vpop.f32.mrb[13].mxu0  ;;  %v2680_v47 = vpop.f32.mrb[13].mxu1 }
 0x14a   : > { %v2609_v48 = vadd.f32 %v2608_v46, %v2607_v44  ;;  %v3537_v49 = vadd.f32 %v2680_v47, %v2679_v45  ;;  %v2610_v50 = vpop.f32.mrb[14].mxu0  ;;  %v2682_v51 = vpop.f32.mrb[14].mxu1 }
 0x14b   : > { %v2611_v52 = vpop.f32.mrb[15].mxu0  ;;  %v2683_v53 = vpop.f32.mrb[15].mxu1 }
 0x14c   : > { %v2612_v54 = vadd.f32 %v2611_v52, %v2610_v50  ;;  %v3539_v55 = vadd.f32 %v2683_v53, %v2682_v51 }
 0x150   : > { %v2613_v56 = vpop.f32.mrb[16].mxu0  ;;  %v2759_v57 = vpop.f32.mrb[16].mxu1 }
 0x151   : > { %v908_v58 = vadd.f32 %v2759_v57, %v2597_v24  ;;  %v2614_v59 = vpop.f32.mrb[17].mxu0  ;;  %v899_v60 = vpop.f32.mrb[17].mxu1 }
 0x152   : > { %v2615_v61 = vadd.f32 %v2614_v59, %v2613_v56  ;;  %v900_v62 = vadd.f32 %v2591_v12, %v899_v60  ;;  %v2616_v63 = vpop.f32.mrb[18].mxu0  ;;  %v2760_v0 = vpop.f32.mrb[18].mxu1 }
 0x153   : > { %v911_v1 = vadd.f32 %v2760_v0, %v2600_v30  ;;  %v2617_v2 = vpop.f32.mrb[19].mxu0  ;;  %v902_v3 = vpop.f32.mrb[19].mxu1 }
 0x154   : > { %v2618_v4 = vadd.f32 %v2617_v2, %v2616_v63  ;;  %v903_v5 = vadd.f32 %v2594_v18, %v902_v3 }
 0x155   : > { %v1027_v6 = vpack.c.bf16 %v911_v1, %v908_v58 }
 0x156   : > { %v1026_v7 = vpack.c.bf16 %v903_v5, %v900_v62 }
 0x157   : > { %1044 = vst.msk [vmem:[#allocation2 + $0x8] sm:$0xff] %vm1042_vm0, %v1027_v6  ;;  %1141 = vrot.lane.b32.xlu1 %v1027_v6, %s3264_s8  ;;  %1077 = vrot.lane.b32.xlu0 %v1027_v6, %s3265_s5 }
 0x158   : > { %1043 = vst.msk [vmem:[#allocation2] sm:$0xff] %vm1042_vm0, %v1026_v7  ;;  %v2619_v8 = vpop.f32.mrb[20].mxu0  ;;  %v2763_v9 = vpop.f32.mrb[20].mxu1 }
 0x159   : > { %v924_v10 = vadd.f32 %v2763_v9, %v2609_v48  ;;  %v2620_v11 = vpop.f32.mrb[21].mxu0  ;;  %v915_v12 = vpop.f32.mrb[21].mxu1 }
 0x15a   : > { %v2621_v14 = vadd.f32 %v2620_v11, %v2619_v8  ;;  %v916_v15 = vadd.f32 %v2603_v36, %v915_v12  ;;  %v2622_v16 = vpop.f32.mrb[22].mxu0  ;;  %v2764_v17 = vpop.f32.mrb[22].mxu1 }
 0x15b   : > { %v927_v18 = vadd.f32 %v2764_v17, %v2612_v54  ;;  %v2623_v20 = vpop.f32.mrb[23].mxu0  ;;  %v918_v21 = vpop.f32.mrb[23].mxu1  ;;  %1075 = vrot.lane.b32.xlu0 %v1026_v7, %s3265_s5 }
 0x15c   : > { %v2624_v22 = vadd.f32 %v2623_v20, %v2622_v16  ;;  %v919_v23 = vadd.f32 %v2606_v42, %v918_v21 }
 0x15d   : > { %v1029_v24 = vpack.c.bf16 %v927_v18, %v924_v10 }
 0x15e   : > { %v1028_v26 = vpack.c.bf16 %v919_v23, %v916_v15 }
 0x15f   : > { %1046 = vst.msk [vmem:[#allocation2 + $0x18] sm:$0xff] %vm1042_vm0, %v1029_v24  ;;  %1081 = vrot.lane.b32.xlu1 %v1029_v24, %s3265_s5  ;;  %1139 = vrot.lane.b32.xlu0 %v1026_v7, %s3264_s8 }
 0x160   : > { %1045 = vst.msk [vmem:[#allocation2 + $0x10] sm:$0xff] %vm1042_vm0, %v1028_v26  ;;  %v2625_v27 = vpop.f32.mrb[24].mxu0  ;;  %v2767_v28 = vpop.f32.mrb[24].mxu1 }
 0x161   : > { %v940_v29 = vadd.f32 %v2767_v28, %v2621_v14  ;;  %v2626_v30 = vpop.f32.mrb[25].mxu0  ;;  %v931_v32 = vpop.f32.mrb[25].mxu1 }
 0x162   : > { %v2627_v33 = vadd.f32 %v2626_v30, %v2625_v27  ;;  %v932_v34 = vadd.f32 %v2615_v61, %v931_v32  ;;  %v2628_v35 = vpop.f32.mrb[26].mxu0  ;;  %v2768_v36 = vpop.f32.mrb[26].mxu1 }
 0x163   : > { %v943_v38 = vadd.f32 %v2768_v36, %v2624_v22  ;;  %v2629_v39 = vpop.f32.mrb[27].mxu0  ;;  %v934_v40 = vpop.f32.mrb[27].mxu1  ;;  %1145 = vrot.lane.b32.xlu1 %v1029_v24, %s3264_s8  ;;  %1143 = vrot.lane.b32.xlu0 %v1028_v26, %s3264_s8 }
 0x164   : > { %v2630_v41 = vadd.f32 %v2629_v39, %v2628_v35  ;;  %v935_v42 = vadd.f32 %v2618_v4, %v934_v40 }
 0x165   : > { %v1031_v44 = vpack.c.bf16 %v943_v38, %v940_v29 }
 0x166   : > { %v1030_v45 = vpack.c.bf16 %v935_v42, %v932_v34 }
 0x167   : > { %1048 = vst.msk [vmem:[#allocation2 + $0x28] sm:$0xff] %vm1042_vm0, %v1031_v44  ;;  %1079 = vrot.lane.b32.xlu1 %v1028_v26, %s3265_s5 }
 0x168   : > { %1047 = vst.msk [vmem:[#allocation2 + $0x20] sm:$0xff] %vm1042_vm0, %v1030_v45  ;;  %v2631_v46 = vpop.f32.mrb[28].mxu0  ;;  %v2771_v47 = vpop.f32.mrb[28].mxu1  ;;  %1083 = vrot.lane.b32.xlu0 %v1030_v45, %s3265_s5 }
 0x169   : > { %v2632_v48 = vpop.f32.mrb[29].mxu0  ;;  %v947_v50 = vpop.f32.mrb[29].mxu1 }
 0x16a   : > { %v2633_v51 = vadd.f32 %v2632_v48, %v2631_v46  ;;  %v948_v52 = vadd.f32 %v2627_v33, %v947_v50  ;;  %v2634_v53 = vpop.f32.mrb[30].mxu0  ;;  %v2772_v54 = vpop.f32.mrb[30].mxu1 }
 0x16b   : > { %v2635_v56 = vpop.f32.mrb[31].mxu0  ;;  %v950_v57 = vpop.f32.mrb[31].mxu1  ;;  %1085 = vrot.lane.b32.xlu1 %v1031_v44, %s3265_s5 }
 0x16c   : > { %v956_v58 = vadd.f32 %v2771_v47, %v2633_v51  ;;  %v2636_v59 = vadd.f32 %v2635_v56, %v2634_v53  ;;  %v951_v60 = vadd.f32 %v2630_v41, %v950_v57  ;;  %1147 = vrot.lane.b32.xlu0 %v1030_v45, %s3264_s8 }
 0x16e   : > { %v959_v61 = vadd.f32 %v2772_v54, %v2636_v59  ;;  %v1032_v62 = vpack.c.bf16 %v951_v60, %v948_v52 }
 0x16f   : > { %1149 = vrot.lane.b32.xlu1 %v1031_v44, %s3264_s8 }
 0x170   : > { %1049 = vst.msk [vmem:[#allocation2 + $0x30] sm:$0xff] %vm1042_vm0, %v1032_v62  ;;  %v2637_v63 = vpop.f32.mrb[32].mxu0  ;;  %v2775_v0 = vpop.f32.mrb[32].mxu1  ;;  %1087 = vrot.lane.b32.xlu0 %v1032_v62, %s3265_s5  ;;  %v1033_v1 = vpack.c.bf16 %v959_v61, %v956_v58 }
 0x171   : > { %v2638_v2 = vpop.f32.mrb[33].mxu0  ;;  %v963_v3 = vpop.f32.mrb[33].mxu1 }
 0x172   : > { %v2639_v4 = vadd.f32 %v2638_v2, %v2637_v63  ;;  %v2640_v5 = vpop.f32.mrb[34].mxu0  ;;  %v2776_v6 = vpop.f32.mrb[34].mxu1  ;;  %1050 = vst.msk [vmem:[#allocation2 + $0x38] sm:$0xff] %vm1042_vm0, %v1033_v1 }
 0x173   : > { %v2641_v7 = vpop.f32.mrb[35].mxu0  ;;  %v966_v8 = vpop.f32.mrb[35].mxu1  ;;  %1089 = vrot.lane.b32.xlu1 %v1033_v1, %s3265_s5 }
 0x174   : > { %v964_v9 = vadd.f32 %v2639_v4, %v963_v3  ;;  %v2642_v10 = vadd.f32 %v2641_v7, %v2640_v5  ;;  %1151 = vrot.lane.b32.xlu0 %v1032_v62, %s3264_s8 }
 0x176   : > { %v967_v11 = vadd.f32 %v2642_v10, %v966_v8 }
 0x177   : > { %1153 = vrot.lane.b32.xlu1 %v1033_v1, %s3264_s8 }
 0x178   : > { %v1034_v12 = vpack.c.bf16 %v967_v11, %v964_v9  ;;  %v2643_v14 = vpop.f32.mrb[36].mxu0  ;;  %v2779_v15 = vpop.f32.mrb[36].mxu1 }
 0x179   : > { %v2644_v16 = vpop.f32.mrb[37].mxu0  ;;  %v979_v17 = vpop.f32.mrb[37].mxu1 }
 0x17a   : > { %1051 = vst.msk [vmem:[#allocation2 + $0x40] sm:$0xff] %vm1042_vm0, %v1034_v12  ;;  %v2645_v18 = vadd.f32 %v2644_v16, %v2643_v14  ;;  %v2646_v20 = vpop.f32.mrb[38].mxu0  ;;  %v2780_v21 = vpop.f32.mrb[38].mxu1  ;;  %1091 = vrot.lane.b32.xlu0 %v1034_v12, %s3265_s5 }
 0x17b   : > { %v2647_v22 = vpop.f32.mrb[39].mxu0  ;;  %v982_v23 = vpop.f32.mrb[39].mxu1 }
 0x17c   : > { %v972_v24 = vadd.f32 %v2775_v0, %v2645_v18  ;;  %v2648_v26 = vadd.f32 %v2647_v22, %v2646_v20 }
 0x17e   : > { %v975_v27 = vadd.f32 %v2776_v6, %v2648_v26  ;;  %1155 = vrot.lane.b32.xlu0 %v1034_v12, %s3264_s8 }
 0x180   : > { %v2649_v28 = vpop.f32.mrb[40].mxu0  ;;  %v2783_v29 = vpop.f32.mrb[40].mxu1  ;;  %v1035_v30 = vpack.c.bf16 %v975_v27, %v972_v24 }
 0x181   : > { %v1004_v32 = vadd.f32 %v2783_v29, %v3529_v25  ;;  %v2650_v33 = vpop.f32.mrb[41].mxu0  ;;  %v995_v34 = vpop.f32.mrb[41].mxu1 }
 0x182   : > { %v2651_v35 = vadd.f32 %v2650_v33, %v2649_v28  ;;  %v996_v36 = vadd.f32 %v3525_v13, %v995_v34  ;;  %v2652_v38 = vpop.f32.mrb[42].mxu0  ;;  %v2784_v39 = vpop.f32.mrb[42].mxu1  ;;  %1052 = vst.msk [vmem:[#allocation2 + $0x48] sm:$0xff] %vm1042_vm0, %v1035_v30  ;;  %1093 = vrot.lane.b32.xlu1 %v1035_v30, %s3265_s5 }
 0x183   : > { %v1007_v40 = vadd.f32 %v2784_v39, %v3531_v31  ;;  %v2653_v41 = vpop.f32.mrb[43].mxu0  ;;  %v998_v42 = vpop.f32.mrb[43].mxu1 }
 0x184   : > { %v980_v44 = vadd.f32 %v2651_v35, %v979_v17  ;;  %v2654_v45 = vadd.f32 %v2653_v41, %v2652_v38  ;;  %v999_v46 = vadd.f32 %v3527_v19, %v998_v42 }
 0x185   : > { %v1039_v25 = vpack.c.bf16 %v1007_v40, %v1004_v32 }
 0x186   : > { %v983_v47 = vadd.f32 %v2654_v45, %v982_v23  ;;  %v1038_v48 = vpack.c.bf16 %v999_v46, %v996_v36  ;;  %1157 = vrot.lane.b32.xlu1 %v1035_v30, %s3264_s8 }
 0x187   : > { %1056 = vst.msk [vmem:[#allocation2 + $0x68] sm:$0xff] %vm1042_vm0, %v1039_v25 }
 0x188   : > { %1055 = vst.msk [vmem:[#allocation2 + $0x60] sm:$0xff] %vm1042_vm0, %v1038_v48  ;;  %v2655_v13 = vpop.f32.mrb[44].mxu0  ;;  %v2787_v50 = vpop.f32.mrb[44].mxu1  ;;  %1099 = vrot.lane.b32.xlu0 %v1038_v48, %s3265_s5  ;;  %v1036_v31 = vpack.c.bf16 %v983_v47, %v980_v44 }
 0x189   : > { %v1020_v51 = vadd.f32 %v2787_v50, %v3537_v49  ;;  %v2656_v52 = vpop.f32.mrb[45].mxu0  ;;  %v1011_v53 = vpop.f32.mrb[45].mxu1 }
 0x18a   : > { %v2657_v54 = vadd.f32 %v2656_v52, %v2655_v13  ;;  %v1012_v19 = vadd.f32 %v3533_v37, %v1011_v53  ;;  %v2658_v56 = vpop.f32.mrb[46].mxu0  ;;  %v2788_v57 = vpop.f32.mrb[46].mxu1  ;;  %1101 = vrot.lane.b32.xlu1 %v1039_v25, %s3265_s5  ;;  %1053 = vst.msk [vmem:[#allocation2 + $0x50] sm:$0xff] %vm1042_vm0, %v1036_v31 }
 0x18b   : > { %v1023_v58 = vadd.f32 %v2788_v57, %v3539_v55  ;;  %v2659_v59 = vpop.f32.mrb[47].mxu0  ;;  %v1014_v60 = vpop.f32.mrb[47].mxu1 }
 0x18c   : > { %v988_v61 = vadd.f32 %v2779_v15, %v2657_v54  ;;  %v2660_v62 = vadd.f32 %v2659_v59, %v2658_v56  ;;  %v1015_v63 = vadd.f32 %v3535_v43, %v1014_v60  ;;  %1163 = vrot.lane.b32.xlu0 %v1038_v48, %s3264_s8 }
 0x18d   : > { %v1041_v49 = vpack.c.bf16 %v1023_v58, %v1020_v51 }
 0x18e   : > { %v991_v0 = vadd.f32 %v2780_v21, %v2660_v62  ;;  %v1040_v1 = vpack.c.bf16 %v1015_v63, %v1012_v19  ;;  %1165 = vrot.lane.b32.xlu1 %v1039_v25, %s3264_s8 }
 0x18f   : > { %1058 = vst.msk [vmem:[#allocation2 + $0x78] sm:$0xff] %vm1042_vm0, %v1041_v49 }
 0x190   : > { %1057 = vst.msk [vmem:[#allocation2 + $0x70] sm:$0xff] %vm1042_vm0, %v1040_v1  ;;  %1095 = vrot.lane.b32.xlu0 %v1036_v31, %s3265_s5  ;;  %v1037_v37 = vpack.c.bf16 %v991_v0, %v988_v61 }
 0x192   : > { %1105 = vrot.lane.b32.xlu1 %v1041_v49, %s3265_s5  ;;  %1054 = vst.msk [vmem:[#allocation2 + $0x58] sm:$0xff] %vm1042_vm0, %v1037_v37 }
 0x194   : > { %1159 = vrot.lane.b32.xlu0 %v1036_v31, %s3264_s8 }
 0x196   : > { %1097 = vrot.lane.b32.xlu1 %v1037_v37, %s3265_s5 }
 0x198   : > { %1103 = vrot.lane.b32.xlu0 %v1040_v1, %s3265_s5 }
 0x19a   : > { %1161 = vrot.lane.b32.xlu1 %v1037_v37, %s3264_s8 }
 0x19c   : > { %1167 = vrot.lane.b32.xlu0 %v1040_v1, %s3264_s8 }
 0x19e   : > { %1169 = vrot.lane.b32.xlu1 %v1041_v49, %s3264_s8 }
 0x1c9   : > { %v1142_v43 = vpop.permute.xlu1 %1141  ;;  %v1078_v55 = vpop.permute.xlu0 %1077 }
 0x1ca   : > { %1188 = vst.msk [vmem:[#allocation4 + $0x8] sm:$0xff] %vm1042_vm0, %v1142_v43  ;;  %1124 = vst.msk [vmem:[#allocation3 + $0x8] sm:$0xff] %vm1042_vm0, %v1078_v55 }
 0x1cd   : > { %v1076_v2 = vpop.permute.xlu0 %1075 }
 0x1ce   : > { %1123 = vst.msk [vmem:[#allocation3] sm:$0xff] %vm1042_vm0, %v1076_v2 }
 0x1d1   : > { %v1082_v3 = vpop.permute.xlu1 %1081  ;;  %v1140_v4 = vpop.permute.xlu0 %1139 }
 0x1d2   : > { %1126 = vst.msk [vmem:[#allocation3 + $0x18] sm:$0xff] %vm1042_vm0, %v1082_v3  ;;  %1187 = vst.msk [vmem:[#allocation4] sm:$0xff] %vm1042_vm0, %v1140_v4 }
 0x1d5   : > { %v1146_v5 = vpop.permute.xlu1 %1145  ;;  %v1144_v6 = vpop.permute.xlu0 %1143 }
 0x1d6   : > { %1190 = vst.msk [vmem:[#allocation4 + $0x18] sm:$0xff] %vm1042_vm0, %v1146_v5  ;;  %1189 = vst.msk [vmem:[#allocation4 + $0x10] sm:$0xff] %vm1042_vm0, %v1144_v6 }
 0x1d9   : > { %v1080_v7 = vpop.permute.xlu1 %1079 }
 0x1da   : > { %1125 = vst.msk [vmem:[#allocation3 + $0x10] sm:$0xff] %vm1042_vm0, %v1080_v7  ;;  %v1084_v8 = vpop.permute.xlu0 %1083 }
 0x1db   : > { %1127 = vst.msk [vmem:[#allocation3 + $0x20] sm:$0xff] %vm1042_vm0, %v1084_v8 }
 0x1dd   : > { %v1086_v9 = vpop.permute.xlu1 %1085 }
 0x1de   : > { %1128 = vst.msk [vmem:[#allocation3 + $0x28] sm:$0xff] %vm1042_vm0, %v1086_v9  ;;  %v1148_v10 = vpop.permute.xlu0 %1147 }
 0x1df   : > { %1191 = vst.msk [vmem:[#allocation4 + $0x20] sm:$0xff] %vm1042_vm0, %v1148_v10 }
 0x1e1   : > { %v1150_v11 = vpop.permute.xlu1 %1149 }
 0x1e2   : > { %1192 = vst.msk [vmem:[#allocation4 + $0x28] sm:$0xff] %vm1042_vm0, %v1150_v11  ;;  %v1088_v12 = vpop.permute.xlu0 %1087 }
 0x1e3   : > { %1129 = vst.msk [vmem:[#allocation3 + $0x30] sm:$0xff] %vm1042_vm0, %v1088_v12 }
 0x1e5   : > { %v1090_v14 = vpop.permute.xlu1 %1089 }
 0x1e6   : > { %1130 = vst.msk [vmem:[#allocation3 + $0x38] sm:$0xff] %vm1042_vm0, %v1090_v14  ;;  %v1152_v15 = vpop.permute.xlu0 %1151 }
 0x1e7   : > { %1193 = vst.msk [vmem:[#allocation4 + $0x30] sm:$0xff] %vm1042_vm0, %v1152_v15 }
 0x1e9   : > { %v1154_v16 = vpop.permute.xlu1 %1153 }
 0x1ea   : > { %1194 = vst.msk [vmem:[#allocation4 + $0x38] sm:$0xff] %vm1042_vm0, %v1154_v16 }
 0x1ec   : > { %v1092_v17 = vpop.permute.xlu0 %1091 }
 0x1ed   : > { %1131 = vst.msk [vmem:[#allocation3 + $0x40] sm:$0xff] %vm1042_vm0, %v1092_v17 }
 0x1f0   : > { %v1156_v18 = vpop.permute.xlu0 %1155 }
 0x1f1   : > { %1195 = vst.msk [vmem:[#allocation4 + $0x40] sm:$0xff] %vm1042_vm0, %v1156_v18 }
 0x1f4   : > { %v1094_v20 = vpop.permute.xlu1 %1093 }
 0x1f5   : > { %1132 = vst.msk [vmem:[#allocation3 + $0x48] sm:$0xff] %vm1042_vm0, %v1094_v20 }
 0x1f8   : > { %v1158_v21 = vpop.permute.xlu1 %1157 }
 0x1f9   : > { %1196 = vst.msk [vmem:[#allocation4 + $0x48] sm:$0xff] %vm1042_vm0, %v1158_v21 }
 0x1fa   : > { %v1100_v22 = vpop.permute.xlu0 %1099 }
 0x1fb   : > { %1135 = vst.msk [vmem:[#allocation3 + $0x60] sm:$0xff] %vm1042_vm0, %v1100_v22 }
 0x1fc   : > { %v1102_v23 = vpop.permute.xlu1 %1101 }
 0x1fd   : > { %1136 = vst.msk [vmem:[#allocation3 + $0x68] sm:$0xff] %vm1042_vm0, %v1102_v23 }
 0x1fe   : > { %v1164_v24 = vpop.permute.xlu0 %1163 }
 0x1ff   : > { %1199 = vst.msk [vmem:[#allocation4 + $0x60] sm:$0xff] %vm1042_vm0, %v1164_v24 }
 0x200   : > { %v1166_v26 = vpop.permute.xlu1 %1165 }
 0x201   : > { %1200 = vst.msk [vmem:[#allocation4 + $0x68] sm:$0xff] %vm1042_vm0, %v1166_v26 }
 0x202   : > { %v1096_v27 = vpop.permute.xlu0 %1095 }
 0x203   : > { %1133 = vst.msk [vmem:[#allocation3 + $0x50] sm:$0xff] %vm1042_vm0, %v1096_v27 }
 0x204   : > { %v1106_v28 = vpop.permute.xlu1 %1105 }
 0x205   : > { %1138 = vst.msk [vmem:[#allocation3 + $0x78] sm:$0xff] %vm1042_vm0, %v1106_v28 }
 0x206   : > { %v1160_v29 = vpop.permute.xlu0 %1159 }
 0x207   : > { %1197 = vst.msk [vmem:[#allocation4 + $0x50] sm:$0xff] %vm1042_vm0, %v1160_v29 }
 0x208   : > { %v1098_v30 = vpop.permute.xlu1 %1097 }
 0x209   : > { %1134 = vst.msk [vmem:[#allocation3 + $0x58] sm:$0xff] %vm1042_vm0, %v1098_v30 }
 0x20a   : > { %v1104_v32 = vpop.permute.xlu0 %1103 }
 0x20b   : > { %1137 = vst.msk [vmem:[#allocation3 + $0x70] sm:$0xff] %vm1042_vm0, %v1104_v32 }
 0x20c   : > { %v1162_v33 = vpop.permute.xlu1 %1161 }
 0x20d   : > { %1198 = vst.msk [vmem:[#allocation4 + $0x58] sm:$0xff] %vm1042_vm0, %v1162_v33 }
 0x20e   : > { %v1168_v34 = vpop.permute.xlu0 %1167 }
 0x20f   : > { %1201 = vst.msk [vmem:[#allocation4 + $0x70] sm:$0xff] %vm1042_vm0, %v1168_v34 }
 0x210   : > { %v1170_v35 = vpop.permute.xlu1 %1169 }
 0x211   : > { %1202 = vst.msk [vmem:[#allocation4 + $0x78] sm:$0xff] %vm1042_vm0, %v1170_v35 }
 0x212 PF: > { %s2525_s9 = sshll.u32 %s3239_s12, 7  ;;  %vm1216_vm1 = vcmask 7168   ;;  %v4268_v36 = vlaneseq  ;;  %s1300_s17 = sadd.s32 1, %s3239_s12  ;;  %v3266_v38 = vmov -inf   ;;  %v3267_v40 = vmov 0.0  }
 0x213   : > { %s3631_s21 = sshra.s32 %s2525_s9, 4  ;;  %1217 = vst.msk [vmem:[#allocation5] sm:$0xff] %vm1216_vm1, %v3266_v38  ;;  %1218 = vst.msk [vmem:[#allocation5 + $0x8] sm:$0xff] %vm1216_vm1, %v3266_v38  ;;  %v3649_v39 = vstv %s2525_s9  ;;  %vm1249_vm2 = vcmask 261120   ;;  %p2527_p7 = scmp.le.s32.totalorder %s1300_s17, 0 }
 0x214   : > { %1219 = vst.msk [vmem:[#allocation5 + $0x10] sm:$0xff] %vm1216_vm1, %v3266_v38  ;;  %1220 = vst.msk [vmem:[#allocation5 + $0x18] sm:$0xff] %vm1216_vm1, %v3266_v38  ;;  %s2526_s22 = sshll.u32 %s3631_s21, 3  ;;  %v1267_v41 = vshrl.u32 %v4268_v36, 7  ;;  %s3751_s24 = smov (!%p2527_p7), 0  }
 0x215   : > { %1221 = vst.msk [vmem:[#allocation5 + $0x20] sm:$0xff] %vm1216_vm1, %v3266_v38  ;;  %1222 = vst.msk [vmem:[#allocation5 + $0x28] sm:$0xff] %vm1216_vm1, %v3266_v38  ;;  %s1207_s23 = scalar_lea.vmem [#allocation2], %s2526_s22 }
 0x216   : > { %1223 = vst.msk [vmem:[#allocation5 + $0x30] sm:$0xff] %vm1216_vm1, %v3266_v38  ;;  %1224 = vst.msk [vmem:[#allocation5 + $0x38] sm:$0xff] %vm1216_vm1, %v3266_v38  ;;  %v3685_v42 = vld [vmem:[%s1207_s23] sm:$0xff]  ;;  %v3687_v44 = vld [vmem:[%s1207_s23 + $0x8] sm:$0xff]  ;;  %v1268_v46 = vadd.s32 8, %v1267_v41  ;;  %v1269_v25 = vadd.s32 16, %v1267_v41  ;;  %v3692_v48 = vadd.s32 %v3649_v39, %v1267_v41 }
 0x217   : > { %1225 = vst.msk [vmem:[#allocation5 + $0x40] sm:$0xff] %vm1216_vm1, %v3266_v38  ;;  %1226 = vst.msk [vmem:[#allocation5 + $0x48] sm:$0xff] %vm1216_vm1, %v3266_v38  ;;  %v3689_v45 = vld [vmem:[%s1207_s23 + $0x10] sm:$0xff]  ;;  %v1270_v47 = vadd.s32 24, %v1267_v41  ;;  %v3694_v13 = vld [vmem:[%s1207_s23 + $0x18] sm:$0xff]  ;;  %v1271_v51 = vadd.s32 32, %v1267_v41 }
 0x218   : > { %1227 = vst.msk [vmem:[#allocation5 + $0x50] sm:$0xff] %vm1216_vm1, %v3266_v38  ;;  %1228 = vst.msk [vmem:[#allocation5 + $0x58] sm:$0xff] %vm1216_vm1, %v3266_v38  ;;  %v3696_v50 = vld [vmem:[%s1207_s23 + $0x20] sm:$0xff]  ;;  %v3698_v31 = vld [vmem:[%s1207_s23 + $0x28] sm:$0xff]  ;;  %v1272_v52 = vadd.s32 40, %v1267_v41  ;;  %v1273_v53 = vadd.s32 48, %v1267_v41  ;;  %v3705_v0 = vadd.s32 %v3649_v39, %v1268_v46  ;;  %v3708_v1 = vadd.s32 %v3649_v39, %v1269_v25 }
 0x219   : > { %1229 = vst.msk [vmem:[#allocation5 + $0x60] sm:$0xff] %vm1216_vm1, %v3266_v38  ;;  %1230 = vst.msk [vmem:[#allocation5 + $0x68] sm:$0xff] %vm1216_vm1, %v3266_v38  ;;  %v3700_v54 = vld [vmem:[%s1207_s23 + $0x30] sm:$0xff]  ;;  %v3702_v19 = vld [vmem:[%s1207_s23 + $0x38] sm:$0xff]  ;;  %v1274_v56 = vadd.s32 56, %v1267_v41  ;;  %v1275_v57 = vadd.s32 64, %v1267_v41  ;;  %v3711_v37 = vadd.s32 %v3649_v39, %v1270_v47  ;;  %v3714_v43 = vadd.s32 %v3649_v39, %v1271_v51 }
 0x21a   : > { %1231 = vst.msk [vmem:[#allocation5 + $0x70] sm:$0xff] %vm1216_vm1, %v3266_v38  ;;  %1232 = vst.msk [vmem:[#allocation5 + $0x78] sm:$0xff] %vm1216_vm1, %v3266_v38  ;;  %v1276_v58 = vadd.s32 72, %v1267_v41  ;;  %v1277_v59 = vadd.s32 80, %v1267_v41  ;;  %v1278_v60 = vadd.s32 88, %v1267_v41  ;;  %v1279_v61 = vadd.s32 96, %v1267_v41 }
 0x21b   : > { %1233 = vst.msk [vmem:[#allocation6] sm:$0xff] %vm1216_vm1, %v3267_v40  ;;  %1234 = vst.msk [vmem:[#allocation6 + $0x8] sm:$0xff] %vm1216_vm1, %v3267_v40  ;;  %v1280_v62 = vadd.s32 104, %v1267_v41  ;;  %v1281_v63 = vadd.s32 112, %v1267_v41  ;;  %v1282_v49 = vadd.s32 120, %v1267_v41  ;;  %v3717_v55 = vadd.s32 %v3649_v39, %v1272_v52 }
 0x21c   : > { %1235 = vst.msk [vmem:[#allocation6 + $0x10] sm:$0xff] %vm1216_vm1, %v3267_v40  ;;  %1236 = vst.msk [vmem:[#allocation6 + $0x18] sm:$0xff] %vm1216_vm1, %v3267_v40  ;;  %v3720_v2 = vadd.s32 %v3649_v39, %v1273_v53  ;;  %v3723_v3 = vadd.s32 %v3649_v39, %v1274_v56  ;;  %v3726_v4 = vadd.s32 %v3649_v39, %v1275_v57 }
 0x21d   : > { %1237 = vst.msk [vmem:[#allocation6 + $0x20] sm:$0xff] %vm1216_vm1, %v3267_v40  ;;  %1238 = vst.msk [vmem:[#allocation6 + $0x28] sm:$0xff] %vm1216_vm1, %v3267_v40  ;;  %v3729_v5 = vadd.s32 %v3649_v39, %v1276_v58  ;;  %v3732_v6 = vadd.s32 %v3649_v39, %v1277_v59  ;;  %v3735_v7 = vadd.s32 %v3649_v39, %v1278_v60 }
 0x21e   : > { %1239 = vst.msk [vmem:[#allocation6 + $0x30] sm:$0xff] %vm1216_vm1, %v3267_v40  ;;  %1240 = vst.msk [vmem:[#allocation6 + $0x38] sm:$0xff] %vm1216_vm1, %v3267_v40  ;;  %v3738_v8 = vadd.s32 %v3649_v39, %v1279_v61  ;;  %v3741_v9 = vadd.s32 %v3649_v39, %v1280_v62  ;;  %v3744_v10 = vadd.s32 %v3649_v39, %v1281_v63 }
 0x21f   : > { %1241 = vst.msk [vmem:[#allocation6 + $0x40] sm:$0xff] %vm1216_vm1, %v3267_v40  ;;  %1242 = vst.msk [vmem:[#allocation6 + $0x48] sm:$0xff] %vm1216_vm1, %v3267_v40  ;;  %v3747_v11 = vadd.s32 %v3649_v39, %v1282_v49 }
 0x220   : > { %1243 = vst.msk [vmem:[#allocation6 + $0x50] sm:$0xff] %vm1216_vm1, %v3267_v40  ;;  %1244 = vst.msk [vmem:[#allocation6 + $0x58] sm:$0xff] %vm1216_vm1, %v3267_v40 }
 0x221   : > { %1245 = vst.msk [vmem:[#allocation6 + $0x60] sm:$0xff] %vm1216_vm1, %v3267_v40  ;;  %1246 = vst.msk [vmem:[#allocation6 + $0x68] sm:$0xff] %vm1216_vm1, %v3267_v40 }
 0x222   : > { %1247 = vst.msk [vmem:[#allocation6 + $0x70] sm:$0xff] %vm1216_vm1, %v3267_v40  ;;  %1248 = vst.msk [vmem:[#allocation6 + $0x78] sm:$0xff] %vm1216_vm1, %v3267_v40 }
 0x223   : > { %1250 = vst.msk [vmem:[#allocation7] sm:$0xff] %vm1249_vm2, %v3267_v40  ;;  %1251 = vst.msk [vmem:[#allocation7 + $0x8] sm:$0xff] %vm1249_vm2, %v3267_v40 }
 0x224   : > { %1252 = vst.msk [vmem:[#allocation7 + $0x10] sm:$0xff] %vm1249_vm2, %v3267_v40  ;;  %1253 = vst.msk [vmem:[#allocation7 + $0x18] sm:$0xff] %vm1249_vm2, %v3267_v40 }
 0x225   : > { %1254 = vst.msk [vmem:[#allocation7 + $0x20] sm:$0xff] %vm1249_vm2, %v3267_v40  ;;  %1255 = vst.msk [vmem:[#allocation7 + $0x28] sm:$0xff] %vm1249_vm2, %v3267_v40 }
 0x226   : > { %1256 = vst.msk [vmem:[#allocation7 + $0x30] sm:$0xff] %vm1249_vm2, %v3267_v40  ;;  %1257 = vst.msk [vmem:[#allocation7 + $0x38] sm:$0xff] %vm1249_vm2, %v3267_v40 }
 0x227   : > { %1258 = vst.msk [vmem:[#allocation7 + $0x40] sm:$0xff] %vm1249_vm2, %v3267_v40  ;;  %1259 = vst.msk [vmem:[#allocation7 + $0x48] sm:$0xff] %vm1249_vm2, %v3267_v40 }
 0x228   : > { %1260 = vst.msk [vmem:[#allocation7 + $0x50] sm:$0xff] %vm1249_vm2, %v3267_v40  ;;  %1261 = vst.msk [vmem:[#allocation7 + $0x58] sm:$0xff] %vm1249_vm2, %v3267_v40 }
 0x229   : > { %1262 = vst.msk [vmem:[#allocation7 + $0x60] sm:$0xff] %vm1249_vm2, %v3267_v40  ;;  %1263 = vst.msk [vmem:[#allocation7 + $0x68] sm:$0xff] %vm1249_vm2, %v3267_v40 }
 0x22a   : > { %1264 = vst.msk [vmem:[#allocation7 + $0x70] sm:$0xff] %vm1249_vm2, %v3267_v40  ;;  %1265 = vst.msk [vmem:[#allocation7 + $0x78] sm:$0xff] %vm1249_vm2, %v3267_v40  ;;  %2405 = sbr.rel (%p2527_p7) target bundleno = 1391 (0x56f), region = 76 }
 0x22b   : > { %4271 = vst [vmem:[#allocation11_spill] sm:$0xff] %v3705_v0  ;;  %4272 = vst [vmem:[#allocation12_spill] sm:$0xff] %v3708_v1 }
 0x22c   : > { %4273 = vst [vmem:[#allocation13_spill] sm:$0xff] %v3720_v2  ;;  %4274 = vst [vmem:[#allocation14_spill] sm:$0xff] %v3723_v3 }
 0x22d   : > { %4275 = vst [vmem:[#allocation15_spill] sm:$0xff] %v3726_v4  ;;  %4276 = vst [vmem:[#allocation16_spill] sm:$0xff] %v3729_v5 }
 0x22e   : > { %4277 = vst [vmem:[#allocation17_spill] sm:$0xff] %v3732_v6  ;;  %4278 = vst [vmem:[#allocation18_spill] sm:$0xff] %v3735_v7 }
 0x22f   : > { %4279 = vst [vmem:[#allocation19_spill] sm:$0xff] %v3738_v8  ;;  %4280 = vst [vmem:[#allocation20_spill] sm:$0xff] %v3741_v9 }
 0x230   : > { %4281 = vst [vmem:[#allocation21_spill] sm:$0xff] %v3744_v10  ;;  %4282 = vst [vmem:[#allocation22_spill] sm:$0xff] %v3747_v11 }
 0x231 LB: >> { %2805 = vmatprep.mubr.msk.bf16.mxu0 %vm1249_vm2, %v3685_v42  ;;  %s2528_s13 = sshll.u32 %s3259_s24, 7  ;;  %v4283_v36 = vlaneseq  ;;  %v3268_v49 = vmov 0   ;;  %s1304_s24 = sadd.s32 1, %s3259_s24   ;;  %s3259_s24 = sphi %s3751_s24, %s1304_s24  }
 0x232   : >> { %s3761_s27 = sshra.s32 %s2528_s13, 4  ;;  %v1477_v33 = vstv %s2528_s13  ;;  %v4284_v1 = vld [vmem:[#allocation12_spill] sm:$0xff]  ;;  %v4285_v0 = vld [vmem:[#allocation11_spill] sm:$0xff]  ;;  %3056 = vset.pattern.permute.xlu1 %v3268_v49  ;;  %3055 = vset.pattern.permute.xlu0 %v3268_v49  ;;  %v3921_v49 = vld [vmem:[#allocation5 + $0x38] sm:$0xff]  ;;  %p1303_p8 = scmp.ge.s32.totalorder %s1304_s24, %s1300_s17 }
 0x233   : >> { %s2529_s28 = sshll.u32 %s3761_s27, 3  ;;  %v1476_v32 = vand.u32 127, %v4283_v36  ;;  %v4286_v2 = vld [vmem:[#allocation13_spill] sm:$0xff]  ;;  %v4287_v3 = vld [vmem:[#allocation14_spill] sm:$0xff] }
 0x234   : >> { %s1311_s30 = scalar_lea.vmem [#allocation3], %s2529_s28  ;;  %v4289_v4 = vld [vmem:[#allocation15_spill] sm:$0xff]  ;;  %v4291_v5 = vld [vmem:[#allocation16_spill] sm:$0xff]  ;;  %s3883_s3 = scalar_lea.vmem [#allocation4], %s2529_s28  ;;  %v3962_v36 = vld [vmem:[#allocation5 + $0x50] sm:$0xff] }
 0x235   : >> { %v1312_v12 = vld [vmem:[%s1311_s30] sm:$0xff]  ;;  %v1313_v14 = vld [vmem:[%s1311_s30 + $0x8] sm:$0xff]  ;;  %v1314_v17 = vld [vmem:[%s1311_s30 + $0x10] sm:$0xff]  ;;  %v3799_v34 = vadd.s32 %v1477_v33, %v1476_v32 }
 0x236   : >> { %2869 = vmatprep.subr.msk.bf16.mxu0 %vm1249_vm2, %v1312_v12  ;;  %v1355_v15 = vsel %vm1249_vm2, %v1312_v12, 0  ;;  %v1358_v16 = vsel %vm1249_vm2, %v1313_v14, 0  ;;  %v1361_v18 = vsel %vm1249_vm2, %v1314_v17, 0  ;;  %v1315_v20 = vld [vmem:[%s1311_s30 + $0x18] sm:$0xff]  ;;  %v1316_v22 = vld [vmem:[%s1311_s30 + $0x20] sm:$0xff]  ;;  %v1317_v24 = vld [vmem:[%s1311_s30 + $0x28] sm:$0xff] }
 0x237   : >> { %2790 = vmatpush3.bf16.xpose.msra.mxu0 %v1355_v15  ;;  %v1364_v21 = vsel %vm1249_vm2, %v1315_v20, 0  ;;  %v1367_v23 = vsel %vm1249_vm2, %v1316_v22, 0  ;;  %v1370_v26 = vsel %vm1249_vm2, %v1317_v24, 0  ;;  %v1318_v27 = vld [vmem:[%s1311_s30 + $0x30] sm:$0xff]  ;;  %v1319_v29 = vld [vmem:[%s1311_s30 + $0x38] sm:$0xff]  ;;  %vm1481_vm3 = vcmp.le.s32.totalorder %v3799_v34, %v4284_v1  ;;  %v4293_v8 = vld [vmem:[#allocation19_spill] sm:$0xff] }
 0x238   : >> { %2870 = vmatprep.subr.msk.bf16.mxu0 %vm1249_vm2, %v1313_v14  ;;  %v1373_v28 = vsel %vm1249_vm2, %v1318_v27, 0  ;;  %v1376_v30 = vsel %vm1249_vm2, %v1319_v29, 0  ;;  %vm1479_vm4 = vcmp.le.s32.totalorder %v3799_v34, %v3692_v48  ;;  %vm1482_vm5 = vcmp.le.s32.totalorder %v3799_v34, %v3711_v37  ;;  %v4288_v6 = vld [vmem:[#allocation17_spill] sm:$0xff]  ;;  %v4290_v7 = vld [vmem:[#allocation18_spill] sm:$0xff]  ;;  %v4295_v9 = vld [vmem:[#allocation20_spill] sm:$0xff] }
 0x239   : >> { %vm1480_vm6 = vcmp.le.s32.totalorder %v3799_v34, %v4285_v0  ;;  %vm1485_vm7 = vcmp.le.s32.totalorder %v3799_v34, %v4286_v2  ;;  %vm1483_vm8 = vcmp.le.s32.totalorder %v3799_v34, %v3714_v43  ;;  %vm1486_vm9 = vcmp.le.s32.totalorder %v3799_v34, %v4287_v3  ;;  %v4292_v10 = vld [vmem:[#allocation21_spill] sm:$0xff]  ;;  %v4294_v11 = vld [vmem:[#allocation22_spill] sm:$0xff]  ;;  %v3889_v32 = vld [vmem:[#allocation5] sm:$0xff] }
 0x23a   : >> { %vm1484_vm10 = vcmp.le.s32.totalorder %v3799_v34, %v3717_v55  ;;  %vm1489_vm11 = vcmp.le.s32.totalorder %v3799_v34, %v4288_v6  ;;  %vm1487_vm12 = vcmp.le.s32.totalorder %v3799_v34, %v4289_v4  ;;  %vm1490_vm13 = vcmp.le.s32.totalorder %v3799_v34, %v4290_v7  ;;  %v3967_v0 = vld [vmem:[#allocation5 + $0x48] sm:$0xff]  ;;  %v1328_v1 = vld [vmem:[%s3883_s3 + $0x30] sm:$0xff]  ;;  %v3980_v4 = vld [vmem:[#allocation5 + $0x60] sm:$0xff] }
 0x23b   : >> { %vm1488_vm14 = vcmp.le.s32.totalorder %v3799_v34, %v4291_v5  ;;  %vm1493_vm15 = vcmp.le.s32.totalorder %v3799_v34, %v4292_v10  ;;  %vm1491_vm0 = vcmp.le.s32.totalorder %v3799_v34, %v4293_v8  ;;  %v3985_v5 = vld [vmem:[#allocation5 + $0x78] sm:$0xff]  ;;  %v3999_v8 = vld [vmem:[#allocation5 + $0x70] sm:$0xff] }
 0x23c   : >> { %v1329_v6 = vld [vmem:[%s3883_s3 + $0x38] sm:$0xff] }
 0x23f   : >> { %2792 = vmatpush3.bf16.xpose.msra.mxu0 %v1358_v16 }
 0x240   : >> { %2871 = vmatprep.subr.msk.bf16.mxu0 %vm1249_vm2, %v1314_v17 }
 0x247   : >> { %2794 = vmatpush3.bf16.xpose.msra.mxu0 %v1361_v18 }
 0x248   : >> { %2872 = vmatprep.subr.msk.bf16.mxu0 %vm1249_vm2, %v1315_v20 }
 0x24f   : >> { %2796 = vmatpush3.bf16.xpose.msra.mxu0 %v1364_v21 }
 0x250   : >> { %2873 = vmatprep.subr.msk.bf16.mxu0 %vm1249_vm2, %v1316_v22 }
 0x257   : >> { %2798 = vmatpush3.bf16.xpose.msra.mxu0 %v1367_v23 }
 0x258   : >> { %2874 = vmatprep.subr.msk.bf16.mxu0 %vm1249_vm2, %v1317_v24 }
 0x25f   : >> { %2800 = vmatpush3.bf16.xpose.msra.mxu0 %v1370_v26 }
 0x260   : >> { %2875 = vmatprep.subr.msk.bf16.mxu0 %vm1249_vm2, %v1318_v27 }
 0x267   : >> { %2802 = vmatpush3.bf16.xpose.msra.mxu0 %v1373_v28  ;;  %v1322_v28 = vld [vmem:[%s3883_s3] sm:$0xff] }
 0x268   : >> { %2876 = vmatprep.subr.msk.bf16.mxu0 %vm1249_vm2, %v1319_v29  ;;  %v1323_v29 = vld [vmem:[%s3883_s3 + $0x8] sm:$0xff]  ;;  %2821 = vmatprep.subr.bf16.mxu1 %v1322_v28 }
 0x269   : >> { %2822 = vmatpush3.bf16.msra.mxu1 %v1322_v28  ;;  %v3935_v28 = vld [vmem:[#allocation5 + $0x28] sm:$0xff] }
 0x26a   : >> { %2823 = vmatprep.subr.bf16.mxu1 %v1323_v29 }
 0x26d   : >> { %2824 = vmatpush3.bf16.msra.mxu1 %v1323_v29  ;;  %v1326_v29 = vld [vmem:[%s3883_s3 + $0x20] sm:$0xff] }
 0x26f   : >> { %2804 = vmatpush3.bf16.xpose.msra.mxu0 %v1376_v30  ;;  %v3887_v30 = vld [vmem:[#allocation5 + $0x10] sm:$0xff] }
 0x276   : >> { %2806 = vmatmul.mubr.msk.bf16.vlgmr.msra.gmra.mrb[0].mxu0 %vm1249_vm2, %v3687_v44 }
 0x277   : >> { %2809 = vmatprep.mubr.msk.bf16.mxu0 %vm1249_vm2, %v3689_v45 }
 0x27e   : >> { %2810 = vmatmul.mubr.msk.bf16.gmra.mrb[4].mxu0 %vm1249_vm2, %v3694_v13 }
 0x27f   : >> { %2813 = vmatprep.mubr.msk.bf16.mxu0 %vm1249_vm2, %v3696_v50 }
 0x286   : >> { %2814 = vmatmul.mubr.msk.bf16.gmra.mrb[8].mxu0 %vm1249_vm2, %v3698_v31 }
 0x287   : >> { %2817 = vmatprep.mubr.msk.bf16.mxu0 %vm1249_vm2, %v3700_v54 }
 0x28e   : >> { %2818 = vmatmul.mubr.msk.bf16.gmra.mrb[12].mxu0 %vm1249_vm2, %v3702_v19 }
 0x349   : >> { %v2807_v35 = vpop.f32.mrb[0].mxu0 }
 0x34a   : >> { %v1412_v38 = vpop.f32.mrb[1].mxu0  ;;  %v3807_v39 = vsel %vm1481_vm3, %v2807_v35, -inf  ;;  %vm1494_vm3 = vcmp.le.s32.totalorder %v3799_v34, %v4294_v11 }
 0x34b   : >> { %1531 = vmax.xlane.f32.xlu1 %v3807_v39  ;;  %v2808_v40 = vpop.f32.mrb[2].mxu0  ;;  %v3812_v41 = vsel %vm1479_vm4, %v1412_v38, -inf  ;;  %vm1492_vm4 = vcmp.le.s32.totalorder %v3799_v34, %v4295_v9  ;;  %v1524_v9 = vld [vmem:[#allocation5 + $0x68] sm:$0xff] }
 0x34c   : >> { %1527 = vmax.xlane.f32.xlu0 %v3812_v41  ;;  %v1415_v46 = vpop.f32.mrb[3].mxu0  ;;  %v3815_v25 = vsel %vm1482_vm5, %v2808_v40, -inf  ;;  %v3897_v40 = vld [vmem:[#allocation5 + $0x18] sm:$0xff] }
 0x34d   : >> { %v3817_v47 = vsel %vm1480_vm6, %v1415_v46, -inf  ;;  %v3902_v46 = vld [vmem:[#allocation5 + $0x8] sm:$0xff] }
 0x34f   : >> { %1533 = vmax.xlane.f32.xlu1 %v3815_v25 }
 0x350   : >> { %1529 = vmax.xlane.f32.xlu0 %v3817_v47 }
 0x351   : >> { %v2811_v51 = vpop.f32.mrb[4].mxu0 }
 0x352   : >> { %v1428_v52 = vpop.f32.mrb[5].mxu0  ;;  %v3827_v53 = vsel %vm1485_vm7, %v2811_v51, -inf }
 0x353   : >> { %v2812_v56 = vpop.f32.mrb[6].mxu0  ;;  %v3831_v57 = vsel %vm1483_vm8, %v1428_v52, -inf  ;;  %v1324_v52 = vld [vmem:[%s3883_s3 + $0x10] sm:$0xff] }
 0x354   : >> { %1535 = vmax.xlane.f32.xlu0 %v3831_v57  ;;  %v1431_v58 = vpop.f32.mrb[7].mxu0  ;;  %v3834_v59 = vsel %vm1486_vm9, %v2812_v56, -inf  ;;  %2825 = vmatprep.subr.bf16.mxu1 %v1324_v52 }
 0x355   : >> { %1541 = vmax.xlane.f32.xlu1 %v3834_v59  ;;  %v3837_v60 = vsel %vm1484_vm10, %v1431_v58, -inf  ;;  %2826 = vmatpush3.bf16.msra.mxu1 %v1324_v52 }
 0x358   : >> { %1539 = vmax.xlane.f32.xlu0 %v3827_v53 }
 0x359   : >> { %1537 = vmax.xlane.f32.xlu1 %v3837_v60  ;;  %v2815_v61 = vpop.f32.mrb[8].mxu0 }
 0x35a   : >> { %v1444_v62 = vpop.f32.mrb[9].mxu0  ;;  %v3849_v63 = vsel %vm1489_vm11, %v2815_v61, -inf }
 0x35b   : >> { %v2816_v12 = vpop.f32.mrb[10].mxu0  ;;  %v3851_v14 = vsel %vm1487_vm12, %v1444_v62, -inf  ;;  %v3917_v62 = vld [vmem:[#allocation5 + $0x20] sm:$0xff] }
 0x35c   : >> { %v3853_v15 = vsel %vm1490_vm13, %v2816_v12, -inf  ;;  %1543 = vmax.xlane.f32.xlu0 %v3851_v14  ;;  %v1447_v16 = vpop.f32.mrb[11].mxu0  ;;  %v1325_v12 = vld [vmem:[%s3883_s3 + $0x18] sm:$0xff] }
 0x35d   : >> { %1549 = vmax.xlane.f32.xlu1 %v3853_v15  ;;  %v3857_v17 = vsel %vm1488_vm14, %v1447_v16, -inf  ;;  %2827 = vmatprep.subr.bf16.mxu1 %v1325_v12 }
 0x35e   : >> { %2828 = vmatpush3.bf16.msra.mxu1 %v1325_v12  ;;  %v3951_v12 = vld [vmem:[#allocation5 + $0x58] sm:$0xff] }
 0x35f   : >> { %2829 = vmatprep.subr.bf16.mxu1 %v1326_v29 }
 0x360   : >> { %1547 = vmax.xlane.f32.xlu0 %v3849_v63 }
 0x361   : >> { %1545 = vmax.xlane.f32.xlu1 %v3857_v17  ;;  %v2819_v18 = vpop.f32.mrb[12].mxu0 }
 0x362   : >> { %v1460_v20 = vpop.f32.mrb[13].mxu0  ;;  %v3869_v21 = vsel %vm1493_vm15, %v2819_v18, -inf  ;;  %2830 = vmatpush3.bf16.msra.mxu1 %v1326_v29 }
 0x363   : >> { %v2820_v22 = vpop.f32.mrb[14].mxu0  ;;  %v3871_v23 = vsel %vm1491_vm0, %v1460_v20, -inf }
 0x364   : >> { %v3873_v24 = vsel %vm1494_vm3, %v2820_v22, -inf  ;;  %1551 = vmax.xlane.f32.xlu0 %v3871_v23  ;;  %v1463_v26 = vpop.f32.mrb[15].mxu0 }
 0x365   : >> { %1557 = vmax.xlane.f32.xlu1 %v3873_v24  ;;  %v3877_v27 = vsel %vm1492_vm4, %v1463_v26, -inf  ;;  %v3931_v26 = vld [vmem:[#allocation5 + $0x30] sm:$0xff] }
 0x368   : >> { %1555 = vmax.xlane.f32.xlu0 %v3869_v21 }
 0x369   : >> { %1553 = vmax.xlane.f32.xlu1 %v3877_v27 }
 0x3d8   : >> { %v1532_v33 = vpop.xlane.xlu1 %1531 }
 0x3d9   : >> { %v3892_v34 = vmax.f32 %v3887_v30, %v1532_v33  ;;  %v1528_v35 = vpop.xlane.xlu0 %1527 }
 0x3da   : >> { %v3895_v38 = vmax.f32 %v3889_v32, %v1528_v35 }
 0x3db   : >> { %2098 = vst.msk [vmem:[#allocation5 + $0x10] sm:$0xff] %vm1216_vm1, %v3892_v34  ;;  %1635 = vperm.xlu1 %3056, %v3892_v34  }
 0x3dc   : >> { %2096 = vst.msk [vmem:[#allocation5] sm:$0xff] %vm1216_vm1, %v3895_v38  ;;  %v1534_v51 = vpop.xlane.xlu1 %1533  ;;  %1625 = vperm.xlu0 %3055, %v3895_v38  }
 0x3dd   : >> { %v3909_v56 = vmax.f32 %v3897_v40, %v1534_v51  ;;  %v1530_v58 = vpop.xlane.xlu0 %1529 }
 0x3de   : >> { %v3912_v61 = vmax.f32 %v3902_v46, %v1530_v58  ;;  %v3946_v58 = vld [vmem:[#allocation5 + $0x40] sm:$0xff] }
 0x3df   : >> { %2099 = vst.msk [vmem:[#allocation5 + $0x18] sm:$0xff] %vm1216_vm1, %v3909_v56  ;;  %1640 = vperm.xlu1 %3056, %v3909_v56  }
 0x3e0   : >> { %2097 = vst.msk [vmem:[#allocation5 + $0x8] sm:$0xff] %vm1216_vm1, %v3912_v61 }
 0x3e1   : >> { %v1536_v16 = vpop.xlane.xlu0 %1535 }
 0x3e2   : >> { %v3925_v18 = vmax.f32 %v3917_v62, %v1536_v16  ;;  %v1542_v20 = vpop.xlane.xlu1 %1541  ;;  %v1327_v16 = vld [vmem:[%s3883_s3 + $0x28] sm:$0xff] }
 0x3e3   : >> { %v3928_v22 = vmax.f32 %v3921_v49, %v1542_v20  ;;  %1630 = vperm.xlu1 %3056, %v3912_v61   ;;  %2831 = vmatprep.subr.bf16.mxu1 %v1327_v16 }
 0x3e4   : >> { %2100 = vst.msk [vmem:[#allocation5 + $0x20] sm:$0xff] %vm1216_vm1, %v3925_v18  ;;  %2832 = vmatpush3.bf16.msra.mxu1 %v1327_v16  ;;  %v1575_v16 = vsub.f32 %v3889_v32, %v3895_v38  ;;  %v1578_v38 = vsub.f32 %v3897_v40, %v3909_v56 }
 0x3e5   : >> { %2103 = vst.msk [vmem:[#allocation5 + $0x38] sm:$0xff] %vm1216_vm1, %v3928_v22  ;;  %v1540_v33 = vpop.xlane.xlu0 %1539  ;;  %2833 = vmatprep.subr.bf16.mxu1 %v1328_v1 }
 0x3e6   : >> { %v3941_v35 = vmax.f32 %v3931_v26, %v1540_v33  ;;  %v1538_v51 = vpop.xlane.xlu1 %1537  ;;  %v1597_v56 = vmul.f32 1.442695, %v1578_v38 }
 0x3e7   : >> { %v3944_v52 = vmax.f32 %v3935_v28, %v1538_v51 }
 0x3e8   : >> { %2102 = vst.msk [vmem:[#allocation5 + $0x30] sm:$0xff] %vm1216_vm1, %v3941_v35  ;;  %1655 = vperm.xlu1 %3056, %v3941_v35   ;;  %2834 = vmatpush3.bf16.msra.mxu1 %v1328_v1  ;;  %v1591_v1 = vmul.f32 1.442695, %v1575_v16  ;;  %v1576_v16 = vsub.f32 %v3902_v46, %v3912_v61  ;;  %v1577_v61 = vsub.f32 %v3887_v30, %v3892_v34 }
 0x3e9   : >> { %2101 = vst.msk [vmem:[#allocation5 + $0x28] sm:$0xff] %vm1216_vm1, %v3944_v52  ;;  %v1544_v20 = vpop.xlane.xlu0 %1543  ;;  %2835 = vmatprep.subr.bf16.mxu1 %v1329_v6 }
 0x3ea   : >> { %v1550_v29 = vpop.xlane.xlu1 %1549  ;;  %v3957_v33 = vmax.f32 %v3946_v58, %v1544_v20  ;;  %3057 = vpow2.f32 %v1591_v1  ;;  %v1593_v1 = vmul.f32 1.442695, %v1576_v16  ;;  %v1595_v38 = vmul.f32 1.442695, %v1577_v61 }
 0x3eb   : >> { %v3960_v51 = vmax.f32 %v3951_v12, %v1550_v29  ;;  %3059 = vpow2.f32 %v1597_v56 }
 0x3ec   : >> { %2104 = vst.msk [vmem:[#allocation5 + $0x40] sm:$0xff] %vm1216_vm1, %v3957_v33  ;;  %1645 = vperm.xlu1 %3056, %v3925_v18   ;;  %2836 = vmatpush3.bf16.msra.mxu1 %v1329_v6  ;;  %3061 = vpow2.f32 %v1593_v1 }
 0x3ed   : >> { %2107 = vst.msk [vmem:[#allocation5 + $0x58] sm:$0xff] %vm1216_vm1, %v3960_v51  ;;  %v1548_v20 = vpop.xlane.xlu0 %1547  ;;  %v1586_v30 = vsub.f32 %v3951_v12, %v3960_v51 }
 0x3ee   : >> { %v1546_v29 = vpop.xlane.xlu1 %1545  ;;  %v3975_v2 = vmax.f32 %v3962_v36, %v1548_v20 }
 0x3ef   : >> { %v3978_v3 = vmax.f32 %v3967_v0, %v1546_v29 }
 0x3f0   : >> { %2106 = vst.msk [vmem:[#allocation5 + $0x50] sm:$0xff] %vm1216_vm1, %v3975_v2  ;;  %1650 = vperm.xlu1 %3056, %v3944_v52  }
 0x3f1   : >> { %2105 = vst.msk [vmem:[#allocation5 + $0x48] sm:$0xff] %vm1216_vm1, %v3978_v3  ;;  %1670 = vperm.xlu0 %3055, %v3978_v3   ;;  %v1552_v32 = vpop.xlane.xlu0 %1551 }
 0x3f2   : >> { %v1558_v20 = vpop.xlane.xlu1 %1557  ;;  %v3994_v29 = vmax.f32 %v3980_v4, %v1552_v32  ;;  %v1580_v32 = vsub.f32 %v3935_v28, %v3944_v52  ;;  %v1582_v28 = vsub.f32 %v3921_v49, %v3928_v22 }
 0x3f3   : >> { %v3997_v7 = vmax.f32 %v3985_v5, %v1558_v20 }
 0x3f4   : >> { %2108 = vst.msk [vmem:[#allocation5 + $0x60] sm:$0xff] %vm1216_vm1, %v3994_v29  ;;  %1660 = vperm.xlu1 %3056, %v3928_v22   ;;  %v1601_v52 = vmul.f32 1.442695, %v1580_v32  ;;  %v4032_v34 = vpop.eup %3057  ;;  %v1581_v22 = vsub.f32 %v3931_v26, %v3941_v35 }
 0x3f5   : >> { %v1590_v40 = vsub.f32 %v3985_v5, %v3997_v7  ;;  %2111 = vst.msk [vmem:[#allocation5 + $0x78] sm:$0xff] %vm1216_vm1, %v3997_v7  ;;  %1680 = vperm.xlu0 %3055, %v3960_v51   ;;  %v1556_v6 = vpop.xlane.xlu0 %1555  ;;  %v4040_v16 = vpop.eup %3059  ;;  %v1585_v51 = vsub.f32 %v3962_v36, %v3975_v2 }
 0x3f6   : >> { %v1554_v20 = vpop.xlane.xlu1 %1553  ;;  %v4014_v10 = vmax.f32 %v3999_v8, %v1556_v6  ;;  %v1579_v6 = vsub.f32 %v3917_v62, %v3925_v18  ;;  %3063 = vpow2.f32 %v1601_v52  ;;  %v1613_v62 = vmul.f32 1.442695, %v1586_v30  ;;  %v4046_v56 = vpop.eup %3061 }
 0x3f7   : >> { %v1572_v11 = vmax.f32 %v1524_v9, %v1554_v20  ;;  %v1605_v20 = vmul.f32 1.442695, %v1582_v28  ;;  %3065 = vpow2.f32 %v1595_v38  ;;  %v1584_v18 = vsub.f32 %v3967_v0, %v3978_v3 }
 0x3f8   : >> { %v1589_v46 = vsub.f32 %v3999_v8, %v4014_v10  ;;  %2110 = vst.msk [vmem:[#allocation5 + $0x70] sm:$0xff] %vm1216_vm1, %v4014_v10  ;;  %1665 = vperm.xlu1 %3056, %v3957_v33   ;;  %v1599_v49 = vmul.f32 1.442695, %v1579_v6  ;;  %v1603_v12 = vmul.f32 1.442695, %v1581_v22  ;;  %v1583_v0 = vsub.f32 %v3946_v58, %v3957_v33 }
 0x3f9   : >> { %2109 = vst.msk [vmem:[#allocation5 + $0x68] sm:$0xff] %vm1216_vm1, %v1572_v11  ;;  %1690 = vperm.xlu0 %3055, %v1572_v11   ;;  %3067 = vpow2.f32 %v1605_v20  ;;  %v1609_v26 = vmul.f32 1.442695, %v1584_v18  ;;  %v1588_v35 = vsub.f32 %v1524_v9, %v1572_v11  ;;  %v1611_v3 = vmul.f32 1.442695, %v1585_v51 }
 0x3fa   : >> { %3069 = vpow2.f32 %v1599_v49  ;;  %v1607_v9 = vmul.f32 1.442695, %v1583_v0  ;;  %v1587_v11 = vsub.f32 %v3980_v4, %v3994_v29 }
 0x3fb   : >> { %3071 = vpow2.f32 %v1613_v62  ;;  %v1617_v36 = vmul.f32 1.442695, %v1588_v35 }
 0x3fc   : >> { %1675 = vperm.xlu1 %3056, %v3975_v2   ;;  %3073 = vpow2.f32 %v1603_v12  ;;  %v1615_v1 = vmul.f32 1.442695, %v1587_v11 }
 0x3fd   : >> { %1700 = vperm.xlu0 %3055, %v3997_v7   ;;  %3075 = vpow2.f32 %v1609_v26 }
 0x3fe   : >> { %3077 = vpow2.f32 %v1611_v3 }
 0x3ff   : >> { %3079 = vpow2.f32 %v1617_v36 }
 0x400   : >> { %1685 = vperm.xlu1 %3056, %v3994_v29   ;;  %v4048_v32 = vpop.eup %3063  ;;  %3081 = vpow2.f32 %v1607_v9 }
 0x401   : >> { %1865 = vperm.xlu0 %3055, %v4032_v34   ;;  %v4054_v2 = vpop.eup %3065  ;;  %3083 = vpow2.f32 %v1615_v1 }
 0x403   : >> { %v4056_v61 = vpop.eup %3067 }
 0x404   : >> { %1695 = vperm.xlu1 %3056, %v4014_v10   ;;  %v4062_v58 = vpop.eup %3069 }
 0x405   : >> { %1880 = vperm.xlu0 %3055, %v4040_v16   ;;  %v4064_v33 = vpop.eup %3071 }
 0x406   : >> { %v4068_v28 = vpop.eup %3073 }
 0x407   : >> { %v4070_v52 = vpop.eup %3075 }
 0x408   : >> { %1870 = vperm.xlu1 %3056, %v4046_v56   ;;  %v4074_v4 = vpop.eup %3077 }
 0x409   : >> { %1890 = vperm.xlu0 %3055, %v4048_v32   ;;  %v4076_v29 = vpop.eup %3079 }
 0x40a   : >> { %v4080_v38 = vpop.eup %3081 }
 0x40b   : >> { %v4083_v6 = vpop.eup %3083 }
 0x40c   : >> { %1875 = vperm.xlu1 %3056, %v4054_v2  }
 0x40d   : >> { %1900 = vperm.xlu0 %3055, %v4056_v61  }
 0x410   : >> { %1885 = vperm.xlu1 %3056, %v4062_v58  }
 0x411   : >> { %1920 = vperm.xlu0 %3055, %v4064_v33  }
 0x414   : >> { %1895 = vperm.xlu1 %3056, %v4068_v28  }
 0x415   : >> { %1910 = vperm.xlu0 %3055, %v4070_v52  }
 0x418   : >> { %1915 = vperm.xlu1 %3056, %v4074_v4  }
 0x419   : >> { %1930 = vperm.xlu0 %3055, %v4076_v29  }
 0x41c   : >> { %1905 = vperm.xlu1 %3056, %v4080_v38  }
 0x420   : >> { %1925 = vperm.xlu1 %3056, %v4083_v6  }
 0x45a   : >> { %v1636_v20 = vpop.permute.xlu1 %1635 }
 0x45b   : >> { %v1705_v30 = vsub.f32 %v3807_v39, %v1636_v20  ;;  %v1626_v49 = vpop.permute.xlu0 %1625 }
 0x45c   : >> { %v1703_v22 = vsub.f32 %v3812_v41, %v1626_v49 }
 0x45d   : >> { %v1723_v62 = vmul.f32 1.442695, %v1705_v30 }
 0x45e   : >> { %v1719_v18 = vmul.f32 1.442695, %v1703_v22  ;;  %v1641_v12 = vpop.permute.xlu1 %1640 }
 0x45f   : >> { %3085 = vpow2.f32 %v1723_v62  ;;  %v1706_v51 = vsub.f32 %v3815_v25, %v1641_v12 }
 0x460   : >> { %3087 = vpow2.f32 %v1719_v18 }
 0x461   : >> { %v1725_v26 = vmul.f32 1.442695, %v1706_v51 }
 0x462   : >> { %v1631_v35 = vpop.permute.xlu1 %1630 }
 0x463   : >> { %3089 = vpow2.f32 %v1725_v26  ;;  %v1704_v0 = vsub.f32 %v3817_v47, %v1631_v35 }
 0x465   : >> { %v1721_v3 = vmul.f32 1.442695, %v1704_v0 }
 0x467   : >> { %3091 = vpow2.f32 %v1721_v3  ;;  %v1656_v36 = vpop.permute.xlu1 %1655 }
 0x468   : >> { %v1709_v39 = vsub.f32 %v3827_v53, %v1656_v36 }
 0x469   : >> { %v3086_v9 = vpop.eup %3085 }
 0x46a   : >> { %v3088_v11 = vpop.eup %3087  ;;  %v1731_v41 = vmul.f32 1.442695, %v1709_v39  ;;  %1787 = vadd.xlane.f32.xlu0 %v3086_v9 }
 0x46b   : >> { %1783 = vadd.xlane.f32.xlu1 %v3088_v11  ;;  %v1646_v1 = vpop.permute.xlu1 %1645 }
 0x46c   : >> { %3093 = vpow2.f32 %v1731_v41  ;;  %v1707_v25 = vsub.f32 %v3831_v57, %v1646_v1 }
 0x46d   : >> { %v3090_v20 = vpop.eup %3089 }
 0x46e   : >> { %v1727_v30 = vmul.f32 1.442695, %v1707_v25  ;;  %v1960_v26 = vpack.c.bf16 %v3090_v20, %v3086_v9 }
 0x46f   : >> { %1789 = vadd.xlane.f32.xlu1 %v3090_v20  ;;  %v1651_v49 = vpop.permute.xlu1 %1650 }
 0x470   : >> { %3095 = vpow2.f32 %v1727_v30  ;;  %v1708_v47 = vsub.f32 %v3837_v60, %v1651_v49  ;;  %v1671_v22 = vpop.permute.xlu0 %1670 }
 0x471   : >> { %v3092_v62 = vpop.eup %3091  ;;  %v1712_v12 = vsub.f32 %v3857_v17, %v1671_v22 }
 0x472   : >> { %v1729_v18 = vmul.f32 1.442695, %v1708_v47  ;;  %1785 = vadd.xlane.f32.xlu0 %v3092_v62  ;;  %v1959_v53 = vpack.c.bf16 %v3092_v62, %v3088_v11 }
 0x473   : >> { %v1661_v51 = vpop.permute.xlu1 %1660  ;;  %v1737_v36 = vmul.f32 1.442695, %v1712_v12 }
 0x474   : >> { %3097 = vpow2.f32 %v1729_v18  ;;  %v1710_v35 = vsub.f32 %v3834_v59, %v1661_v51  ;;  %v1681_v57 = vpop.permute.xlu0 %1680  ;;  %2837 = vmatprep.mubr.bf16.mxu1 %v1959_v53 }
 0x475   : >> { %2838 = vmatmul.mubr.bf16.vlgmr.msra.gmra.mrb[0].mxu1 %v1960_v26  ;;  %v1714_v60 = vsub.f32 %v3853_v15, %v1681_v57 }
 0x476   : >> { %v3094_v0 = vpop.eup %3093  ;;  %v1733_v3 = vmul.f32 1.442695, %v1710_v35 }
 0x477   : >> { %1795 = vadd.xlane.f32.xlu0 %v3094_v0  ;;  %v1666_v39 = vpop.permute.xlu1 %1665  ;;  %v1741_v9 = vmul.f32 1.442695, %v1714_v60 }
 0x478   : >> { %3099 = vpow2.f32 %v1733_v3  ;;  %v1711_v11 = vsub.f32 %v3851_v14, %v1666_v39  ;;  %v1691_v41 = vpop.permute.xlu0 %1690 }
 0x479   : >> { %3101 = vpow2.f32 %v1737_v36  ;;  %v1716_v59 = vsub.f32 %v3877_v27, %v1691_v41 }
 0x47a   : >> { %v3096_v17 = vpop.eup %3095  ;;  %v1735_v1 = vmul.f32 1.442695, %v1711_v11 }
 0x47b   : >> { %1791 = vadd.xlane.f32.xlu0 %v3096_v17  ;;  %v1676_v25 = vpop.permute.xlu1 %1675  ;;  %v1745_v47 = vmul.f32 1.442695, %v1716_v59 }
 0x47c   : >> { %3103 = vpow2.f32 %v1735_v1  ;;  %v1713_v20 = vsub.f32 %v3849_v63, %v1676_v25  ;;  %v1701_v30 = vpop.permute.xlu0 %1700  ;;  %v1619_v1 = vmul.f32 1.442695, %v1589_v46 }
 0x47d   : >> { %3105 = vpow2.f32 %v1741_v9  ;;  %v1718_v22 = vsub.f32 %v3873_v24, %v1701_v30  ;;  %v1621_v9 = vmul.f32 1.442695, %v1590_v40 }
 0x47e   : >> { %v3098_v49 = vpop.eup %3097  ;;  %v1739_v15 = vmul.f32 1.442695, %v1713_v20 }
 0x47f   : >> { %v1686_v14 = vpop.permute.xlu1 %1685  ;;  %v1961_v62 = vpack.c.bf16 %v3098_v49, %v3096_v17  ;;  %v1749_v12 = vmul.f32 1.442695, %v1718_v22 }
 0x480   : >> { %3107 = vpow2.f32 %v1739_v15  ;;  %v1715_v18 = vsub.f32 %v3871_v23, %v1686_v14  ;;  %v4114_v20 = vpop.permute.xlu0 %1865 }
 0x481   : >> { %2841 = vmatprep.mubr.bf16.mxu1 %v1961_v62  ;;  %3109 = vpow2.f32 %v1745_v47  ;;  %v1753_v62 = vld [vmem:[#allocation6 + $0x10] sm:$0xff] }
 0x482   : >> { %v3100_v53 = vpop.eup %3099  ;;  %v1743_v27 = vmul.f32 1.442695, %v1715_v18 }
 0x483   : >> { %1797 = vadd.xlane.f32.xlu1 %v3100_v53  ;;  %v1696_v51 = vpop.permute.xlu1 %1695  ;;  %v1962_v63 = vpack.c.bf16 %v3100_v53, %v3094_v0  ;;  %v3102_v35 = vpop.eup %3101  ;;  %v1751_v53 = vld [vmem:[#allocation6] sm:$0xff] }
 0x484   : >> { %3111 = vpow2.f32 %v1743_v27  ;;  %v1717_v26 = vsub.f32 %v3869_v21, %v1696_v51  ;;  %v4118_v8 = vpop.permute.xlu0 %1880  ;;  %v1769_v27 = vmul.f32 %v4054_v2, %v1753_v62  ;;  %v1767_v51 = vmul.f32 %v4032_v34, %v1751_v53  ;;  %v1757_v34 = vld [vmem:[#allocation6 + $0x30] sm:$0xff]  ;;  %v1756_v53 = vld [vmem:[#allocation6 + $0x28] sm:$0xff] }
 0x485   : >> { %2842 = vmatmul.mubr.bf16.gmra.mrb[4].mxu1 %v1962_v63  ;;  %3113 = vpow2.f32 %v1749_v12 }
 0x486   : >> { %v3104_v57 = vpop.eup %3103  ;;  %v1747_v24 = vmul.f32 1.442695, %v1717_v26 }
 0x487   : >> { %1793 = vadd.xlane.f32.xlu1 %v3098_v49  ;;  %v1963_v3 = vpack.c.bf16 %v3102_v35, %v3104_v57  ;;  %v3106_v23 = vpop.eup %3105  ;;  %v4116_v30 = vpop.permute.xlu1 %1870 }
 0x488   : >> { %3115 = vpow2.f32 %v1747_v24  ;;  %v4122_v46 = vpop.permute.xlu0 %1890 }
 0x489   : >> { %2845 = vmatprep.mubr.bf16.mxu1 %v1963_v3  ;;  %3117 = vpow2.f32 %v1619_v1  ;;  %v1752_v3 = vld [vmem:[#allocation6 + $0x8] sm:$0xff] }
 0x48a   : >> { %v3108_v36 = vpop.eup %3107  ;;  %3119 = vpow2.f32 %v1621_v9 }
 0x48b   : >> { %1805 = vadd.xlane.f32.xlu1 %v3106_v23  ;;  %1803 = vadd.xlane.f32.xlu0 %v3108_v36  ;;  %v1964_v60 = vpack.c.bf16 %v3106_v23, %v3108_v36  ;;  %v3110_v39 = vpop.eup %3109  ;;  %v4120_v10 = vpop.permute.xlu1 %1875 }
 0x48c   : >> { %v4126_v7 = vpop.permute.xlu0 %1900 }
 0x48d   : >> { %2846 = vmatmul.mubr.bf16.gmra.mrb[8].mxu1 %v1964_v60  ;;  %v1768_v60 = vmul.f32 %v4046_v56, %v1752_v3  ;;  %v1758_v56 = vld [vmem:[#allocation6 + $0x38] sm:$0xff]  ;;  %v1760_v3 = vld [vmem:[#allocation6 + $0x48] sm:$0xff] }
 0x48e   : >> { %v3112_v0 = vpop.eup %3111  ;;  %v1774_v9 = vmul.f32 %v4056_v61, %v1758_v56  ;;  %v1759_v61 = vld [vmem:[#allocation6 + $0x40] sm:$0xff] }
 0x48f   : >> { %1801 = vadd.xlane.f32.xlu1 %v3102_v35  ;;  %1799 = vadd.xlane.f32.xlu0 %v3104_v57  ;;  %v1965_v21 = vpack.c.bf16 %v3110_v39, %v3112_v0  ;;  %v3114_v11 = vpop.eup %3113  ;;  %v4124_v5 = vpop.permute.xlu1 %1885  ;;  %v1754_v35 = vld [vmem:[#allocation6 + $0x18] sm:$0xff] }
 0x490   : >> { %v4130_v49 = vpop.permute.xlu0 %1920  ;;  %v1770_v24 = vmul.f32 %v4040_v16, %v1754_v35 }
 0x491   : >> { %2849 = vmatprep.mubr.bf16.mxu1 %v1965_v21 }
 0x492   : >> { %v3116_v41 = vpop.eup %3115 }
 0x493   : >> { %1813 = vadd.xlane.f32.xlu1 %v3114_v11  ;;  %1811 = vadd.xlane.f32.xlu0 %v3116_v41  ;;  %v1966_v17 = vpack.c.bf16 %v3114_v11, %v3116_v41  ;;  %v4108_v59 = vpop.eup %3117  ;;  %v4128_v40 = vpop.permute.xlu1 %1895  ;;  %v1755_v11 = vld [vmem:[#allocation6 + $0x20] sm:$0xff] }
 0x494   : >> { %v4111_v25 = vpop.eup %3119  ;;  %v4134_v47 = vpop.permute.xlu0 %1910  ;;  %v1771_v16 = vmul.f32 %v4062_v58, %v1755_v11 }
 0x495   : >> { %2850 = vmatmul.mubr.bf16.gmra.mrb[12].mxu1 %v1966_v17 }
 0x497   : >> { %1809 = vadd.xlane.f32.xlu1 %v3110_v39  ;;  %1807 = vadd.xlane.f32.xlu0 %v3112_v0  ;;  %v4132_v15 = vpop.permute.xlu1 %1915  ;;  %v1773_v0 = vmul.f32 %v4068_v28, %v1757_v34  ;;  %v1772_v28 = vmul.f32 %v4048_v32, %v1756_v53  ;;  %v1775_v32 = vmul.f32 %v4080_v38, %v1759_v61  ;;  %v1765_v34 = vld [vmem:[#allocation6 + $0x70] sm:$0xff]  ;;  %v1764_v38 = vld [vmem:[#allocation6 + $0x68] sm:$0xff] }
 0x498   : >> { %v4138_v14 = vpop.permute.xlu0 %1930 }
 0x49b   : >> { %v4136_v22 = vpop.permute.xlu1 %1905 }
 0x49f   : >> { %v4140_v18 = vpop.permute.xlu1 %1925 }
 0x4a8   : >> { %1935 = vperm.xlu1 %3056, %v4108_v59  }
 0x4ad   : >> { %1940 = vperm.xlu0 %3055, %v4111_v25  }
 0x4f7   : >> { %v1788_v12 = vpop.xlane.xlu0 %1787 }
 0x4f8   : >> { %v1817_v63 = vadd.f32 %v1788_v12, %v1769_v27  ;;  %v1784_v26 = vpop.xlane.xlu1 %1783 }
 0x4f9   : >> { %v1815_v57 = vadd.f32 %v1784_v26, %v1767_v51  ;;  %v1761_v51 = vld [vmem:[#allocation6 + $0x50] sm:$0xff] }
 0x4fa   : >> { %1833 = vst.msk [vmem:[#allocation6 + $0x10] sm:$0xff] %vm1216_vm1, %v1817_v63  ;;  %v1762_v63 = vld [vmem:[#allocation6 + $0x58] sm:$0xff]  ;;  %v1777_v58 = vmul.f32 %v4074_v4, %v1761_v51  ;;  %v1848_v51 = vld [vmem:[#allocation7 + $0x8] sm:$0xff] }
 0x4fb   : >> { %1831 = vst.msk [vmem:[#allocation6] sm:$0xff] %vm1216_vm1, %v1815_v57  ;;  %v1778_v35 = vmul.f32 %v4064_v33, %v1762_v63  ;;  %v1766_v4 = vld [vmem:[#allocation6 + $0x78] sm:$0xff] }
 0x4fc   : >> { %v1790_v23 = vpop.xlane.xlu1 %1789  ;;  %v1782_v11 = vmul.f32 %v4111_v25, %v1766_v4  ;;  %v1849_v25 = vld [vmem:[#allocation7 + $0x10] sm:$0xff] }
 0x4fd   : >> { %v1818_v36 = vadd.f32 %v1790_v23, %v1770_v24  ;;  %v1945_v63 = vmul.f32 %v4120_v10, %v1849_v25  ;;  %v1851_v10 = vld [vmem:[#allocation7 + $0x20] sm:$0xff] }
 0x4ff   : >> { %1834 = vst.msk [vmem:[#allocation6 + $0x18] sm:$0xff] %vm1216_vm1, %v1818_v36  ;;  %v1786_v2 = vpop.xlane.xlu0 %1785 }
 0x500   : >> { %v1816_v39 = vadd.f32 %v1786_v2, %v1768_v60  ;;  %v1776_v60 = vmul.f32 %v4070_v52, %v1760_v3 }
 0x502   : >> { %1832 = vst.msk [vmem:[#allocation6 + $0x8] sm:$0xff] %vm1216_vm1, %v1816_v39 }
 0x504   : >> { %v1796_v21 = vpop.xlane.xlu0 %1795 }
 0x505   : >> { %v1821_v41 = vadd.f32 %v1796_v21, %v1773_v0  ;;  %v1781_v21 = vmul.f32 %v4108_v59, %v1765_v34 }
 0x507   : >> { %1837 = vst.msk [vmem:[#allocation6 + $0x30] sm:$0xff] %vm1216_vm1, %v1821_v41 }
 0x508   : >> { %v1792_v17 = vpop.xlane.xlu0 %1791 }
 0x509   : >> { %v1819_v1 = vadd.f32 %v1792_v17, %v1771_v16  ;;  %v1763_v17 = vld [vmem:[#allocation6 + $0x60] sm:$0xff] }
 0x50a   : >> { %v1779_v56 = vmul.f32 %v4083_v6, %v1763_v17 }
 0x50b   : >> { %1835 = vst.msk [vmem:[#allocation6 + $0x20] sm:$0xff] %vm1216_vm1, %v1819_v1 }
 0x510   : >> { %v1798_v62 = vpop.xlane.xlu1 %1797 }
 0x511   : >> { %v1822_v27 = vadd.f32 %v1798_v62, %v1774_v9  ;;  %v1780_v9 = vmul.f32 %v4076_v29, %v1764_v38 }
 0x513   : >> { %1838 = vst.msk [vmem:[#allocation6 + $0x38] sm:$0xff] %vm1216_vm1, %v1822_v27 }
 0x514   : >> { %v1794_v12 = vpop.xlane.xlu1 %1793 }
 0x515   : >> { %v1820_v26 = vadd.f32 %v1794_v12, %v1772_v28  ;;  %v1847_v28 = vld [vmem:[#allocation7] sm:$0xff]  ;;  %v1850_v12 = vld [vmem:[#allocation7 + $0x18] sm:$0xff] }
 0x516   : >> { %v1946_v6 = vmul.f32 %v4118_v8, %v1850_v12  ;;  %v1854_v8 = vld [vmem:[#allocation7 + $0x38] sm:$0xff] }
 0x517   : >> { %1836 = vst.msk [vmem:[#allocation6 + $0x28] sm:$0xff] %vm1216_vm1, %v1820_v26  ;;  %v1943_v26 = vmul.f32 %v4114_v20, %v1847_v28  ;;  %v1853_v20 = vld [vmem:[#allocation7 + $0x30] sm:$0xff] }
 0x518   : >> { %v1804_v57 = vpop.xlane.xlu0 %1803  ;;  %v1806_v24 = vpop.xlane.xlu1 %1805  ;;  %v1861_v28 = vld [vmem:[#allocation7 + $0x70] sm:$0xff] }
 0x519   : >> { %v1825_v23 = vadd.f32 %v1804_v57, %v1777_v58  ;;  %v1826_v36 = vadd.f32 %v1806_v24, %v1778_v35  ;;  %v1944_v57 = vmul.f32 %v4116_v30, %v1848_v51  ;;  %v1947_v30 = vmul.f32 %v4124_v5, %v1851_v10  ;;  %v1858_v5 = vld [vmem:[#allocation7 + $0x58] sm:$0xff]  ;;  %v1859_v51 = vld [vmem:[#allocation7 + $0x60] sm:$0xff] }
 0x51b   : >> { %1841 = vst.msk [vmem:[#allocation6 + $0x50] sm:$0xff] %vm1216_vm1, %v1825_v23  ;;  %1842 = vst.msk [vmem:[#allocation6 + $0x58] sm:$0xff] %vm1216_vm1, %v1826_v36 }
 0x51c   : >> { %v1800_v2 = vpop.xlane.xlu0 %1799  ;;  %v1802_v39 = vpop.xlane.xlu1 %1801 }
 0x51d   : >> { %v1823_v0 = vadd.f32 %v1800_v2, %v1775_v32  ;;  %v1824_v33 = vadd.f32 %v1802_v39, %v1776_v60  ;;  %v1852_v32 = vld [vmem:[#allocation7 + $0x28] sm:$0xff]  ;;  %v1949_v60 = vmul.f32 %v4128_v40, %v1853_v20  ;;  %v1950_v39 = vmul.f32 %v4126_v7, %v1854_v8  ;;  %v1855_v40 = vld [vmem:[#allocation7 + $0x40] sm:$0xff] }
 0x51e   : >> { %v1856_v7 = vld [vmem:[#allocation7 + $0x48] sm:$0xff] }
 0x51f   : >> { %1839 = vst.msk [vmem:[#allocation6 + $0x40] sm:$0xff] %vm1216_vm1, %v1823_v0  ;;  %1840 = vst.msk [vmem:[#allocation6 + $0x48] sm:$0xff] %vm1216_vm1, %v1824_v33  ;;  %v1948_v0 = vmul.f32 %v4122_v46, %v1852_v32  ;;  %v1951_v46 = vmul.f32 %v4136_v22, %v1855_v40  ;;  %v1862_v22 = vld [vmem:[#allocation7 + $0x78] sm:$0xff] }
 0x520   : >> { %v1812_v41 = vpop.xlane.xlu0 %1811  ;;  %v1814_v16 = vpop.xlane.xlu1 %1813 }
 0x521   : >> { %v1829_v1 = vadd.f32 %v1812_v41, %v1781_v21  ;;  %v1830_v52 = vadd.f32 %v1814_v16, %v1782_v11  ;;  %v1857_v16 = vld [vmem:[#allocation7 + $0x50] sm:$0xff] }
 0x522   : >> { %v1953_v38 = vmul.f32 %v4132_v15, %v1857_v16 }
 0x523   : >> { %1845 = vst.msk [vmem:[#allocation6 + $0x70] sm:$0xff] %vm1216_vm1, %v1829_v1  ;;  %1846 = vst.msk [vmem:[#allocation6 + $0x78] sm:$0xff] %vm1216_vm1, %v1830_v52  ;;  %v1954_v52 = vmul.f32 %v4130_v49, %v1858_v5 }
 0x524   : >> { %v1808_v62 = vpop.xlane.xlu0 %1807  ;;  %v1810_v53 = vpop.xlane.xlu1 %1809 }
 0x525   : >> { %v1827_v27 = vadd.f32 %v1808_v62, %v1779_v56  ;;  %v1828_v59 = vadd.f32 %v1810_v53, %v1780_v9  ;;  %v1952_v62 = vmul.f32 %v4134_v47, %v1856_v7 }
 0x527   : >> { %1843 = vst.msk [vmem:[#allocation6 + $0x60] sm:$0xff] %vm1216_vm1, %v1827_v27  ;;  %1844 = vst.msk [vmem:[#allocation6 + $0x68] sm:$0xff] %vm1216_vm1, %v1828_v59 }
 0x528   : >> { %v1936_v12 = vpop.permute.xlu1 %1935 }
 0x529   : >> { %v1957_v47 = vmul.f32 %v1936_v12, %v1861_v28 }
 0x52c   : >> { %v1941_v49 = vpop.permute.xlu0 %1940 }
 0x548   : >> { %v2839_v58 = vpop.f32.mrb[0].mxu1 }
 0x549   : >> { %v2066_v29 = vadd.f32 %v2839_v58, %v1945_v63  ;;  %v2001_v35 = vpop.f32.mrb[1].mxu1  ;;  %v1860_v63 = vld [vmem:[#allocation7 + $0x68] sm:$0xff] }
 0x54a   : >> { %v2064_v24 = vadd.f32 %v2001_v35, %v1943_v26  ;;  %v2840_v61 = vpop.f32.mrb[2].mxu1  ;;  %v1955_v26 = vmul.f32 %v4140_v18, %v1859_v51 }
 0x54b   : >> { %2082 = vst.msk [vmem:[#allocation7 + $0x10] sm:$0xff] %vm1249_vm2, %v2066_v29  ;;  %v2067_v3 = vadd.f32 %v2840_v61, %v1946_v6  ;;  %v2004_v23 = vpop.f32.mrb[3].mxu1  ;;  %v1958_v6 = vmul.f32 %v1941_v49, %v1862_v22 }
 0x54c   : >> { %2080 = vst.msk [vmem:[#allocation7] sm:$0xff] %vm1249_vm2, %v2064_v24  ;;  %v2065_v36 = vadd.f32 %v2004_v23, %v1944_v57  ;;  %v1956_v57 = vmul.f32 %v4138_v14, %v1860_v63 }
 0x54d   : >> { %2083 = vst.msk [vmem:[#allocation7 + $0x18] sm:$0xff] %vm1249_vm2, %v2067_v3 }
 0x54e   : >> { %2081 = vst.msk [vmem:[#allocation7 + $0x8] sm:$0xff] %vm1249_vm2, %v2065_v36 }
 0x558   : >> { %v2843_v2 = vpop.f32.mrb[4].mxu1 }
 0x559   : >> { %v2070_v34 = vadd.f32 %v2843_v2, %v1949_v60  ;;  %v2017_v4 = vpop.f32.mrb[5].mxu1 }
 0x55a   : >> { %v2068_v33 = vadd.f32 %v2017_v4, %v1947_v30  ;;  %v2844_v21 = vpop.f32.mrb[6].mxu1 }
 0x55b   : >> { %2086 = vst.msk [vmem:[#allocation7 + $0x30] sm:$0xff] %vm1249_vm2, %v2070_v34  ;;  %v2071_v11 = vadd.f32 %v2844_v21, %v1950_v39  ;;  %v2020_v41 = vpop.f32.mrb[7].mxu1 }
 0x55c   : >> { %2084 = vst.msk [vmem:[#allocation7 + $0x20] sm:$0xff] %vm1249_vm2, %v2068_v33  ;;  %v2069_v17 = vadd.f32 %v2020_v41, %v1948_v0 }
 0x55d   : >> { %2087 = vst.msk [vmem:[#allocation7 + $0x38] sm:$0xff] %vm1249_vm2, %v2071_v11 }
 0x55e   : >> { %2085 = vst.msk [vmem:[#allocation7 + $0x28] sm:$0xff] %vm1249_vm2, %v2069_v17 }
 0x560   : >> { %v2847_v1 = vpop.f32.mrb[8].mxu1 }
 0x561   : >> { %v2074_v56 = vadd.f32 %v2847_v1, %v1953_v38  ;;  %v2033_v9 = vpop.f32.mrb[9].mxu1 }
 0x562   : >> { %v2072_v53 = vadd.f32 %v2033_v9, %v1951_v46  ;;  %v2848_v27 = vpop.f32.mrb[10].mxu1 }
 0x563   : >> { %2090 = vst.msk [vmem:[#allocation7 + $0x50] sm:$0xff] %vm1249_vm2, %v2074_v56  ;;  %v2075_v59 = vadd.f32 %v2848_v27, %v1954_v52  ;;  %v2036_v25 = vpop.f32.mrb[11].mxu1 }
 0x564   : >> { %2088 = vst.msk [vmem:[#allocation7 + $0x40] sm:$0xff] %vm1249_vm2, %v2072_v53  ;;  %v2073_v15 = vadd.f32 %v2036_v25, %v1952_v62 }
 0x565   : >> { %2091 = vst.msk [vmem:[#allocation7 + $0x58] sm:$0xff] %vm1249_vm2, %v2075_v59 }
 0x566   : >> { %2089 = vst.msk [vmem:[#allocation7 + $0x48] sm:$0xff] %vm1249_vm2, %v2073_v15 }
 0x568   : >> { %v2851_v58 = vpop.f32.mrb[12].mxu1  ;;  %1306 = sbr.rel (!%p1303_p8) target bundleno = 561 (0x231), region = 82 }
 0x569   : >> { %v2078_v29 = vadd.f32 %v2851_v58, %v1957_v47  ;;  %v2049_v35 = vpop.f32.mrb[13].mxu1 }
 0x56a   : >> { %v2076_v24 = vadd.f32 %v2049_v35, %v1955_v26  ;;  %v2852_v61 = vpop.f32.mrb[14].mxu1 }
 0x56b   : >> { %2094 = vst.msk [vmem:[#allocation7 + $0x70] sm:$0xff] %vm1249_vm2, %v2078_v29  ;;  %v2079_v3 = vadd.f32 %v2852_v61, %v1958_v6  ;;  %v2052_v23 = vpop.f32.mrb[15].mxu1 }
 0x56c   : >> { %2092 = vst.msk [vmem:[#allocation7 + $0x60] sm:$0xff] %vm1249_vm2, %v2076_v24  ;;  %v2077_v36 = vadd.f32 %v2052_v23, %v1956_v57 }
 0x56d   : >> { %2095 = vst.msk [vmem:[#allocation7 + $0x78] sm:$0xff] %vm1249_vm2, %v2079_v3 }
 0x56e   : >> { %2093 = vst.msk [vmem:[#allocation7 + $0x68] sm:$0xff] %vm1249_vm2, %v2077_v36 }
 0x56f PF: > { %v2130_v14 = vld [vmem:[#allocation6 + $0x10] sm:$0xff]  ;;  %v2128_v18 = vld [vmem:[#allocation6] sm:$0xff]  ;;  %v2131_v20 = vld [vmem:[#allocation6 + $0x18] sm:$0xff]  ;;  %v3269_v10 = vmov 0   ;;  %vm2320_vm1 = vcmask 257024  }
 0x570   : > { %3122 = vset.pattern.permute.xlu1 %v3269_v10  ;;  %3121 = vset.pattern.permute.xlu0 %v3269_v10  ;;  %3123 = vrcp.f32 %v2130_v14  ;;  %v2129_v8 = vld [vmem:[#allocation6 + $0x8] sm:$0xff]  ;;  %v2132_v60 = vld [vmem:[#allocation6 + $0x20] sm:$0xff]  ;;  %v2135_v30 = vld [vmem:[#allocation6 + $0x38] sm:$0xff] }
 0x571   : > { %3125 = vrcp.f32 %v2128_v18  ;;  %v2133_v32 = vld [vmem:[#allocation6 + $0x28] sm:$0xff]  ;;  %v2134_v2 = vld [vmem:[#allocation6 + $0x30] sm:$0xff]  ;;  %v2136_v48 = vld [vmem:[#allocation6 + $0x40] sm:$0xff] }
 0x572   : > { %3127 = vrcp.f32 %v2131_v20  ;;  %v2137_v44 = vld [vmem:[#allocation6 + $0x48] sm:$0xff]  ;;  %v2139_v50 = vld [vmem:[#allocation6 + $0x58] sm:$0xff]  ;;  %v2138_v54 = vld [vmem:[#allocation6 + $0x50] sm:$0xff] }
 0x573   : > { %3129 = vrcp.f32 %v2129_v8  ;;  %v2141_v37 = vld [vmem:[#allocation6 + $0x68] sm:$0xff]  ;;  %v2140_v55 = vld [vmem:[#allocation6 + $0x60] sm:$0xff]  ;;  %v2143_v4 = vld [vmem:[#allocation6 + $0x78] sm:$0xff] }
 0x574   : > { %3131 = vrcp.f32 %v2133_v32  ;;  %v2142_v33 = vld [vmem:[#allocation6 + $0x70] sm:$0xff]  ;;  %v2112_v38 = vld [vmem:[#allocation7] sm:$0xff]  ;;  %v2115_v9 = vld [vmem:[#allocation7 + $0x18] sm:$0xff] }
 0x575   : > { %3133 = vrcp.f32 %v2132_v60  ;;  %v2114_v7 = vld [vmem:[#allocation7 + $0x10] sm:$0xff]  ;;  %v2113_v53 = vld [vmem:[#allocation7 + $0x8] sm:$0xff]  ;;  %v2116_v22 = vld [vmem:[#allocation7 + $0x20] sm:$0xff] }
 0x576   : > { %3135 = vrcp.f32 %v2135_v30  ;;  %v2117_v15 = vld [vmem:[#allocation7 + $0x28] sm:$0xff]  ;;  %v2119_v6 = vld [vmem:[#allocation7 + $0x38] sm:$0xff]  ;;  %v2118_v35 = vld [vmem:[#allocation7 + $0x30] sm:$0xff] }
 0x577   : > { %3137 = vrcp.f32 %v2134_v2  ;;  %v2121_v36 = vld [vmem:[#allocation7 + $0x48] sm:$0xff]  ;;  %v2120_v18 = vld [vmem:[#allocation7 + $0x40] sm:$0xff]  ;;  %v2123_v30 = vld [vmem:[#allocation7 + $0x58] sm:$0xff] }
 0x578   : > { %3139 = vrcp.f32 %v2137_v44 }
 0x579   : > { %3141 = vrcp.f32 %v2136_v48 }
 0x57a   : > { %v3124_v39 = vpop.eup %3123  ;;  %3143 = vrcp.f32 %v2139_v50  ;;  %v2125_v50 = vld [vmem:[#allocation7 + $0x68] sm:$0xff] }
 0x57b   : > { %v3126_v42 = vpop.eup %3125  ;;  %2172 = vperm.xlu1 %3122, %v3124_v39   ;;  %3145 = vrcp.f32 %v2138_v54  ;;  %v2122_v39 = vld [vmem:[#allocation7 + $0x50] sm:$0xff]  ;;  %v2124_v54 = vld [vmem:[#allocation7 + $0x60] sm:$0xff] }
 0x57c   : > { %v3128_v45 = vpop.eup %3127  ;;  %2162 = vperm.xlu0 %3121, %v3126_v42   ;;  %3147 = vrcp.f32 %v2141_v37 }
 0x57d   : > { %v3130_v13 = vpop.eup %3129  ;;  %3149 = vrcp.f32 %v2140_v55 }
 0x57e   : > { %v3132_v31 = vpop.eup %3131  ;;  %3151 = vrcp.f32 %v2143_v4  ;;  %v2127_v4 = vld [vmem:[#allocation7 + $0x78] sm:$0xff] }
 0x57f   : > { %2177 = vperm.xlu1 %3122, %v3128_v45   ;;  %v3134_v19 = vpop.eup %3133  ;;  %3153 = vrcp.f32 %v2142_v33  ;;  %v2126_v33 = vld [vmem:[#allocation7 + $0x70] sm:$0xff] }
 0x580   : > { %2167 = vperm.xlu0 %3121, %v3130_v13   ;;  %v3136_v43 = vpop.eup %3135 }
 0x581   : > { %v3138_v34 = vpop.eup %3137 }
 0x582   : > { %v3140_v0 = vpop.eup %3139 }
 0x583   : > { %2187 = vperm.xlu1 %3122, %v3132_v31   ;;  %v3142_v21 = vpop.eup %3141 }
 0x584   : > { %2182 = vperm.xlu0 %3121, %v3134_v19   ;;  %v3144_v11 = vpop.eup %3143 }
 0x585   : > { %v3146_v41 = vpop.eup %3145 }
 0x586   : > { %v3148_v16 = vpop.eup %3147 }
 0x587   : > { %2197 = vperm.xlu1 %3122, %v3136_v43   ;;  %v3150_v17 = vpop.eup %3149 }
 0x588   : > { %2192 = vperm.xlu0 %3121, %v3138_v34   ;;  %v3152_v40 = vpop.eup %3151 }
 0x589   : > { %v3154_v5 = vpop.eup %3153 }
 0x58b   : > { %2207 = vperm.xlu1 %3122, %v3140_v0  }
 0x58c   : > { %2202 = vperm.xlu0 %3121, %v3142_v21  }
 0x58f   : > { %2217 = vperm.xlu1 %3122, %v3144_v11  }
 0x590   : > { %2212 = vperm.xlu0 %3121, %v3146_v41  }
 0x593   : > { %2227 = vperm.xlu1 %3122, %v3148_v16  }
 0x594   : > { %2222 = vperm.xlu0 %3121, %v3150_v17  }
 0x597   : > { %2237 = vperm.xlu1 %3122, %v3152_v40  }
 0x598   : > { %2232 = vperm.xlu0 %3121, %v3154_v5  }
 0x5fa   : > { %v2173_v46 = vpop.permute.xlu1 %2172 }
 0x5fb   : > { %v2242_v1 = vmul.f32 %v2173_v46, %v2114_v7  ;;  %v2163_v52 = vpop.permute.xlu0 %2162 }
 0x5fc   : > { %v2240_v56 = vmul.f32 %v2163_v52, %v2112_v38 }
 0x5fd   : > { %v2559_v62 = vpack.c.bf16 %v2242_v1, %v2242_v1 }
 0x5fe   : > { %v2557_v27 = vpack.c.bf16 %v2240_v56, %v2240_v56  ;;  %v2178_v59 = vpop.permute.xlu1 %2177 }
 0x5ff   : > { %2323 = vst.msk [vmem:[%s3402_s20 + $0x8] sm:$0xf] %vm2320_vm1, %v2559_v62  ;;  %v2243_v25 = vmul.f32 %v2178_v59, %v2115_v9  ;;  %v2168_v28 = vpop.permute.xlu0 %2167 }
 0x600   : > { %2321 = vst.msk [vmem:[%s3402_s20] sm:$0xf] %vm2320_vm1, %v2557_v27  ;;  %v2241_v12 = vmul.f32 %v2168_v28, %v2113_v53 }
 0x601   : > { %v2560_v51 = vpack.c.bf16 %v2243_v25, %v2243_v25 }
 0x602   : > { %v2558_v49 = vpack.c.bf16 %v2241_v12, %v2241_v12  ;;  %v2188_v63 = vpop.permute.xlu1 %2187 }
 0x603   : > { %2324 = vst.msk [vmem:[%s3402_s20 + $0xc] sm:$0xf] %vm2320_vm1, %v2560_v51  ;;  %v2245_v47 = vmul.f32 %v2188_v63, %v2117_v15  ;;  %v2183_v26 = vpop.permute.xlu0 %2182 }
 0x604   : > { %2322 = vst.msk [vmem:[%s3402_s20 + $0x4] sm:$0xf] %vm2320_vm1, %v2558_v49  ;;  %v2244_v58 = vmul.f32 %v2183_v26, %v2116_v22 }
 0x605   : > { %v2562_v29 = vpack.c.bf16 %v2245_v47, %v2245_v47 }
 0x606   : > { %v2561_v57 = vpack.c.bf16 %v2244_v58, %v2244_v58  ;;  %v2198_v24 = vpop.permute.xlu1 %2197 }
 0x607   : > { %2326 = vst.msk [vmem:[%s3402_s20 + $0x14] sm:$0xf] %vm2320_vm1, %v2562_v29  ;;  %v2247_v61 = vmul.f32 %v2198_v24, %v2119_v6  ;;  %v2193_v3 = vpop.permute.xlu0 %2192 }
 0x608   : > { %2325 = vst.msk [vmem:[%s3402_s20 + $0x10] sm:$0xf] %vm2320_vm1, %v2561_v57  ;;  %v2246_v23 = vmul.f32 %v2193_v3, %v2118_v35 }
 0x609   : > { %v2564_v14 = vpack.c.bf16 %v2247_v61, %v2247_v61 }
 0x60a   : > { %v2563_v20 = vpack.c.bf16 %v2246_v23, %v2246_v23  ;;  %v2208_v10 = vpop.permute.xlu1 %2207 }
 0x60b   : > { %2328 = vst.msk [vmem:[%s3402_s20 + $0x1c] sm:$0xf] %vm2320_vm1, %v2564_v14  ;;  %v2249_v8 = vmul.f32 %v2208_v10, %v2121_v36  ;;  %v2203_v32 = vpop.permute.xlu0 %2202 }
 0x60c   : > { %2327 = vst.msk [vmem:[%s3402_s20 + $0x18] sm:$0xf] %vm2320_vm1, %v2563_v20  ;;  %v2248_v60 = vmul.f32 %v2203_v32, %v2120_v18 }
 0x60d   : > { %v2566_v2 = vpack.c.bf16 %v2249_v8, %v2249_v8 }
 0x60e   : > { %v2565_v42 = vpack.c.bf16 %v2248_v60, %v2248_v60  ;;  %v2218_v44 = vpop.permute.xlu1 %2217 }
 0x60f   : > { %2330 = vst.msk [vmem:[%s3402_s20 + $0x24] sm:$0xf] %vm2320_vm1, %v2566_v2  ;;  %v2251_v45 = vmul.f32 %v2218_v44, %v2123_v30  ;;  %v2213_v48 = vpop.permute.xlu0 %2212 }
 0x610   : > { %2329 = vst.msk [vmem:[%s3402_s20 + $0x20] sm:$0xf] %vm2320_vm1, %v2565_v42  ;;  %v2250_v13 = vmul.f32 %v2213_v48, %v2122_v39 }
 0x611   : > { %v2568_v31 = vpack.c.bf16 %v2251_v45, %v2251_v45 }
 0x612   : > { %v2567_v19 = vpack.c.bf16 %v2250_v13, %v2250_v13  ;;  %v2228_v37 = vpop.permute.xlu1 %2227 }
 0x613   : > { %2332 = vst.msk [vmem:[%s3402_s20 + $0x2c] sm:$0xf] %vm2320_vm1, %v2568_v31  ;;  %v2253_v43 = vmul.f32 %v2228_v37, %v2125_v50  ;;  %v2223_v55 = vpop.permute.xlu0 %2222 }
 0x614   : > { %2331 = vst.msk [vmem:[%s3402_s20 + $0x28] sm:$0xf] %vm2320_vm1, %v2567_v19  ;;  %v2252_v34 = vmul.f32 %v2223_v55, %v2124_v54 }
 0x615   : > { %v2570_v0 = vpack.c.bf16 %v2253_v43, %v2253_v43 }
 0x616   : > { %v2569_v21 = vpack.c.bf16 %v2252_v34, %v2252_v34  ;;  %v2238_v11 = vpop.permute.xlu1 %2237 }
 0x617   : > { %2334 = vst.msk [vmem:[%s3402_s20 + $0x34] sm:$0xf] %vm2320_vm1, %v2570_v0  ;;  %v2255_v41 = vmul.f32 %v2238_v11, %v2127_v4  ;;  %v2233_v16 = vpop.permute.xlu0 %2232 }
 0x618   : > { %2333 = vst.msk [vmem:[%s3402_s20 + $0x30] sm:$0xf] %vm2320_vm1, %v2569_v21  ;;  %v2254_v17 = vmul.f32 %v2233_v16, %v2126_v33 }
 0x619   : > { %v2572_v40 = vpack.c.bf16 %v2255_v41, %v2255_v41 }
 0x61a   : > { %v2571_v5 = vpack.c.bf16 %v2254_v17, %v2254_v17 }
 0x61b   : > { %2336 = vst.msk [vmem:[%s3402_s20 + $0x3c] sm:$0xf] %vm2320_vm1, %v2572_v40 }
 0x61c   : > { %2335 = vst.msk [vmem:[%s3402_s20 + $0x38] sm:$0xf] %vm2320_vm1, %v2571_v5 }
 0x61d PF: > { %s15_s16 = sadd.s32 1, %s3255_s16   ;;  %s4296_s9 = smov %s3231_s10 }
 0x61e   : > { %p12_p9 = scmp.ge.s32.totalorder %s15_s16, 6   ;;  %s4297_s10 = smov %s3235_s11 }
 0x61f   : > { %s4298_s11 = smov %s3349_s26  ;;  %s4299_s12 = smov %s3247_s14 }
 0x620   : > { %s4300_s13 = smov %s3251_s15  ;;  %s4301_s14 = smov %s4304_s18 }
 0x621   : > { %s4302_s15 = smov %s4308_s19  ;;  %14 = sbr.rel (!%p12_p9) target bundleno = 5 (0x5), region = 93 }
 0x628   :  { %2367 = vsyncpa [#allocation9], 1 }
 0x629   :  { %2369 = vsyncpa [#allocation9 + $0x1], 1 }

</bundles_post_ra>
